<compile_context>
chip_gen: v5e
topology: v5e:2x2
jax: 0.10.0
libtpu: 0.0.40
codegen_flags: <defaults>
</compile_context>

<pallas_src>
import functools
import math

import jax
import jax.numpy as jnp
from jax.experimental import pallas as pl
from jax.experimental.pallas import tpu as pltpu

_LANES = 128  # pad the final (width-3) output to a lane-dense 128 columns


# ----------------------------- kernel ---------------------------------------


def _leaky_relu(x, slope=0.2):
    # Equivalent to where(x>0, x, slope*x) for 0 < slope < 1; single VPU op.
    return jnp.maximum(x, slope * x)


def generator_kernel(
    z_ref,
    w1_ref, b1_ref,
    w2_ref, b2_ref,
    w3_ref, b3_ref,
    w4_ref, b4_ref,
    w5_ref, b5_ref,
    o_ref,
):
    """Whole 5-layer MLP on one (tm, noise_dim) activation tile held in VMEM."""

    def lin(x_f32, w_ref, b_ref):
        # bf16 x bf16 MXU matmul with f32 accumulation, f32 bias add.
        return (
            jnp.dot(
                x_f32.astype(jnp.bfloat16),
                w_ref[...],
                preferred_element_type=jnp.float32,
            )
            + b_ref[...]
        )

    x = z_ref[...]                                   # f32 activations
    x = _leaky_relu(lin(x, w1_ref, b1_ref))
    x = _leaky_relu(lin(x, w2_ref, b2_ref))
    x = _leaky_relu(lin(x, w3_ref, b3_ref))
    x = _leaky_relu(lin(x, w4_ref, b4_ref))
    y = lin(x, w5_ref, b5_ref)                       # padded to 128 lanes
    o_ref[...] = jnp.clip(y, -1.0, 1.0).astype(o_ref.dtype)


# ----------------------------- wrapper ---------------------------------------


def _round_up(x, m):
    return ((x + m - 1) // m) * m


@functools.partial(
    jax.jit, static_argnames=("batch_size", "n_lags", "noise_dim", "tile_m")
)
def generator_forward(params, z, batch_size, n_lags, noise_dim, tile_m=256):
    """params: list of (W_bf16 (in,out), b_f32 (1,out)); z: (B, n_lags, noise_dim) f32."""
    M = batch_size * n_lags
    z2d = z.reshape(M, noise_dim).astype(jnp.float32)

    (w1, b1), (w2, b2), (w3, b3), (w4, b4), (w5, b5) = params
    out_dim = w5.shape[1]

    # Zero-pad the last layer to 128 output lanes -> lane-dense output stores.
    w5p = jnp.pad(w5, ((0, 0), (0, _LANES - out_dim)))
    b5p = jnp.pad(b5, ((0, 0), (0, _LANES - out_dim)))

    # Tile along M; sublane-align the tile (multiple of 8) and cap at tile_m.
    tm = min(tile_m, _round_up(M, 8))
    m_pad = _round_up(M, tm)
    if m_pad != M:
        z2d = jnp.pad(z2d, ((0, m_pad - M), (0, 0)))
    grid = (m_pad // tm,)

    # Grid-invariant operands: DMA'd once, VMEM-resident across all M tiles.
    const2d = lambda shape: pl.BlockSpec(shape, lambda i: (0, 0))

    out2d = pl.pallas_call(
        generator_kernel,
        out_shape=jax.ShapeDtypeStruct((m_pad, _LANES), jnp.float32),
        grid=grid,
        in_specs=[
            pl.BlockSpec((tm, noise_dim), lambda i: (i, 0)),
            const2d(w1.shape), const2d(b1.shape),
            const2d(w2.shape), const2d(b2.shape),
            const2d(w3.shape), const2d(b3.shape),
            const2d(w4.shape), const2d(b4.shape),
            const2d(w5p.shape), const2d(b5p.shape),
        ],
        out_specs=pl.BlockSpec((tm, _LANES), lambda i: (i, 0)),
        compiler_params=pltpu.CompilerParams(
            dimension_semantics=("parallel",),   # v7x: shard M tiles across 2 TCs
            vmem_limit_bytes=32 << 20,           # kernel needs < 8 MiB; headroom
        ),
    )(z2d, w1, b1, w2, b2, w3, b3, w4, b4, w5p, b5p)

    return out2d[:M, :out_dim].reshape(batch_size, n_lags, out_dim)


def init_params(key, noise_dim):
    """nn.Linear-style init U[-1/sqrt(in), 1/sqrt(in)].

    Weights stored as (in_features, out_features) in bf16; biases (1, out) f32.
    """
    dims = [noise_dim, 128, 256, 512, 1024, 3]
    params = []
    for i in range(len(dims) - 1):
        fan_in, fan_out = dims[i], dims[i + 1]
        key, kw, kb = jax.random.split(key, 3)
        bound = 1.0 / math.sqrt(fan_in)
        w = jax.random.uniform(
            kw, (fan_in, fan_out), dtype=jnp.float32, minval=-bound, maxval=bound
        ).astype(jnp.bfloat16)
        b = jax.random.uniform(
            kb, (1, fan_out), dtype=jnp.float32, minval=-bound, maxval=bound
        )
        params.append((w, b))
    return params


def reference_forward(params, z2d):
    """Pure-JAX reference with the same bf16-matmul / f32-accumulate numerics."""
    x = z2d.astype(jnp.float32)
    n = len(params)
    for i, (w, b) in enumerate(params):
        x = jnp.dot(
            x.astype(jnp.bfloat16), w, preferred_element_type=jnp.float32
        ) + b
        if i < n - 1:
            x = jnp.where(x > 0, x, 0.2 * x)
    return jnp.clip(x, -1.0, 1.0)


# ----------------------------- main ------------------------------------------

if __name__ == "__main__":
    noise_dim = 32  # config.G_input_dim
    n_lags = 8      # config.n_lags

    key = jax.random.PRNGKey(0)
    k_params, k_z_small, k_z_big = jax.random.split(key, 3)
    params = init_params(k_params, noise_dim)

    # PyTorch forward draws z internally; we draw it deterministically here.
    # Case 1: tiny M (spec-sized) -> single tile.
    batch_size = 2
    z = jax.random.normal(k_z_small, (batch_size, n_lags, noise_dim), jnp.float32)
    out = generator_forward(params, z, batch_size, n_lags, noise_dim)
    out = jax.block_until_ready(out)
    ref = reference_forward(params, z.reshape(batch_size * n_lags, noise_dim))
    ref = ref.reshape(batch_size, n_lags, 3)
    assert out.shape == (batch_size, n_lags, 3), out.shape
    assert jnp.allclose(out, ref, atol=2e-3, rtol=2e-3), float(
        jnp.max(jnp.abs(out - ref))
    )

    # Case 2: larger M (exercises the multi-tile / pipelined path, M=512).
    batch_big = 64
    z_big = jax.random.normal(k_z_big, (batch_big, n_lags, noise_dim), jnp.float32)
    out_big = generator_forward(params, z_big, batch_big, n_lags, noise_dim)
    out_big = jax.block_until_ready(out_big)
    ref_big = reference_forward(params, z_big.reshape(batch_big * n_lags, noise_dim))
    ref_big = ref_big.reshape(batch_big, n_lags, 3)
    assert out_big.shape == (batch_big, n_lags, 3), out_big.shape
    assert jnp.allclose(out_big, ref_big, atol=2e-3, rtol=2e-3), float(
        jnp.max(jnp.abs(out_big - ref_big))
    )

    print("KERNEL_OK")
</pallas_src>

<mosaic_0001>
module attributes {stable_mosaic.version = 11 : i64} {
  func.func @generator_kernel(%arg0: i32, %arg1: memref<16x32xf32, #tpu.memory_space<vmem>>, %arg2: memref<32x128xbf16, #tpu.memory_space<vmem>>, %arg3: memref<1x128xf32, #tpu.memory_space<vmem>>, %arg4: memref<128x256xbf16, #tpu.memory_space<vmem>>, %arg5: memref<1x256xf32, #tpu.memory_space<vmem>>, %arg6: memref<256x512xbf16, #tpu.memory_space<vmem>>, %arg7: memref<1x512xf32, #tpu.memory_space<vmem>>, %arg8: memref<512x1024xbf16, #tpu.memory_space<vmem>>, %arg9: memref<1x1024xf32, #tpu.memory_space<vmem>>, %arg10: memref<1024x128xbf16, #tpu.memory_space<vmem>>, %arg11: memref<1x128xf32, #tpu.memory_space<vmem>>, %arg12: memref<16x128xf32, #tpu.memory_space<vmem>>) attributes {dimension_semantics = [#tpu.dimension_semantics<parallel>], iteration_bounds = array<i64: 1>, scalar_prefetch = 0 : i64, scratch_operands = 0 : i64, tpu.core_type = #tpu.core_type<tc>, window_params = [{transform_indices = @transform_0, window_bounds = array<i64: 16, 32>}, {pipeline_mode = #tpu.pipeline_mode<synchronous>, transform_indices = @transform_1, window_bounds = array<i64: 32, 128>}, {pipeline_mode = #tpu.pipeline_mode<synchronous>, transform_indices = @transform_2, window_bounds = array<i64: 1, 128>}, {pipeline_mode = #tpu.pipeline_mode<synchronous>, transform_indices = @transform_3, window_bounds = array<i64: 128, 256>}, {pipeline_mode = #tpu.pipeline_mode<synchronous>, transform_indices = @transform_4, window_bounds = array<i64: 1, 256>}, {pipeline_mode = #tpu.pipeline_mode<synchronous>, transform_indices = @transform_5, window_bounds = array<i64: 256, 512>}, {pipeline_mode = #tpu.pipeline_mode<synchronous>, transform_indices = @transform_6, window_bounds = array<i64: 1, 512>}, {pipeline_mode = #tpu.pipeline_mode<synchronous>, transform_indices = @transform_7, window_bounds = array<i64: 512, 1024>}, {pipeline_mode = #tpu.pipeline_mode<synchronous>, transform_indices = @transform_8, window_bounds = array<i64: 1, 1024>}, {pipeline_mode = #tpu.pipeline_mode<synchronous>, transform_indices = @transform_9, window_bounds = array<i64: 1024, 128>}, {pipeline_mode = #tpu.pipeline_mode<synchronous>, transform_indices = @transform_10, window_bounds = array<i64: 1, 128>}, {transform_indices = @transform_11, window_bounds = array<i64: 16, 128>}]} {
    %c0 = arith.constant 0 : index
    %c0_0 = arith.constant 0 : index
    %0 = vector.load %arg1[%c0, %c0_0] : memref<16x32xf32, #tpu.memory_space<vmem>>, vector<16x32xf32>
    %1 = arith.truncf %0 : vector<16x32xf32> to vector<16x32xbf16>
    %c0_1 = arith.constant 0 : index
    %c0_2 = arith.constant 0 : index
    %2 = vector.load %arg2[%c0_1, %c0_2] : memref<32x128xbf16, #tpu.memory_space<vmem>>, vector<32x128xbf16>
    %cst = arith.constant dense<0.000000e+00> : vector<16x128xf32>
    %3 = tpu.matmul %1, %2, %cst {dimension_numbers = #tpu.dot_dimension_numbers<[1], [0], [0], [1], [0, 0, 1, 1], [], []>} : vector<16x32xbf16>, vector<32x128xbf16>, vector<16x128xf32> -> vector<16x128xf32>
    %c0_3 = arith.constant 0 : index
    %c0_4 = arith.constant 0 : index
    %4 = vector.load %arg3[%c0_3, %c0_4] : memref<1x128xf32, #tpu.memory_space<vmem>>, vector<1x128xf32>
    %5 = vector.broadcast %4 : vector<1x128xf32> to vector<16x128xf32>
    %6 = arith.addf %3, %5 : vector<16x128xf32>
    %cst_5 = arith.constant 2.000000e-01 : f32
    %7 = vector.broadcast %cst_5 : f32 to vector<16x128xf32>
    %8 = arith.mulf %7, %6 : vector<16x128xf32>
    %9 = arith.maximumf %6, %8 : vector<16x128xf32>
    %10 = arith.truncf %9 : vector<16x128xf32> to vector<16x128xbf16>
    %c0_6 = arith.constant 0 : index
    %c0_7 = arith.constant 0 : index
    %11 = vector.load %arg4[%c0_6, %c0_7] : memref<128x256xbf16, #tpu.memory_space<vmem>>, vector<128x256xbf16>
    %cst_8 = arith.constant dense<0.000000e+00> : vector<16x256xf32>
    %12 = tpu.matmul %10, %11, %cst_8 {dimension_numbers = #tpu.dot_dimension_numbers<[1], [0], [0], [1], [0, 0, 1, 1], [], []>} : vector<16x128xbf16>, vector<128x256xbf16>, vector<16x256xf32> -> vector<16x256xf32>
    %c0_9 = arith.constant 0 : index
    %c0_10 = arith.constant 0 : index
    %13 = vector.load %arg5[%c0_9, %c0_10] : memref<1x256xf32, #tpu.memory_space<vmem>>, vector<1x256xf32>
    %14 = vector.broadcast %13 : vector<1x256xf32> to vector<16x256xf32>
    %15 = arith.addf %12, %14 : vector<16x256xf32>
    %cst_11 = arith.constant 2.000000e-01 : f32
    %16 = vector.broadcast %cst_11 : f32 to vector<16x256xf32>
    %17 = arith.mulf %16, %15 : vector<16x256xf32>
    %18 = arith.maximumf %15, %17 : vector<16x256xf32>
    %19 = arith.truncf %18 : vector<16x256xf32> to vector<16x256xbf16>
    %c0_12 = arith.constant 0 : index
    %c0_13 = arith.constant 0 : index
    %20 = vector.load %arg6[%c0_12, %c0_13] : memref<256x512xbf16, #tpu.memory_space<vmem>>, vector<256x512xbf16>
    %cst_14 = arith.constant dense<0.000000e+00> : vector<16x512xf32>
    %21 = tpu.matmul %19, %20, %cst_14 {dimension_numbers = #tpu.dot_dimension_numbers<[1], [0], [0], [1], [0, 0, 1, 1], [], []>} : vector<16x256xbf16>, vector<256x512xbf16>, vector<16x512xf32> -> vector<16x512xf32>
    %c0_15 = arith.constant 0 : index
    %c0_16 = arith.constant 0 : index
    %22 = vector.load %arg7[%c0_15, %c0_16] : memref<1x512xf32, #tpu.memory_space<vmem>>, vector<1x512xf32>
    %23 = vector.broadcast %22 : vector<1x512xf32> to vector<16x512xf32>
    %24 = arith.addf %21, %23 : vector<16x512xf32>
    %cst_17 = arith.constant 2.000000e-01 : f32
    %25 = vector.broadcast %cst_17 : f32 to vector<16x512xf32>
    %26 = arith.mulf %25, %24 : vector<16x512xf32>
    %27 = arith.maximumf %24, %26 : vector<16x512xf32>
    %28 = arith.truncf %27 : vector<16x512xf32> to vector<16x512xbf16>
    %c0_18 = arith.constant 0 : index
    %c0_19 = arith.constant 0 : index
    %29 = vector.load %arg8[%c0_18, %c0_19] : memref<512x1024xbf16, #tpu.memory_space<vmem>>, vector<512x1024xbf16>
    %cst_20 = arith.constant dense<0.000000e+00> : vector<16x1024xf32>
    %30 = tpu.matmul %28, %29, %cst_20 {dimension_numbers = #tpu.dot_dimension_numbers<[1], [0], [0], [1], [0, 0, 1, 1], [], []>} : vector<16x512xbf16>, vector<512x1024xbf16>, vector<16x1024xf32> -> vector<16x1024xf32>
    %c0_21 = arith.constant 0 : index
    %c0_22 = arith.constant 0 : index
    %31 = vector.load %arg9[%c0_21, %c0_22] : memref<1x1024xf32, #tpu.memory_space<vmem>>, vector<1x1024xf32>
    %32 = vector.broadcast %31 : vector<1x1024xf32> to vector<16x1024xf32>
    %33 = arith.addf %30, %32 : vector<16x1024xf32>
    %cst_23 = arith.constant 2.000000e-01 : f32
    %34 = vector.broadcast %cst_23 : f32 to vector<16x1024xf32>
    %35 = arith.mulf %34, %33 : vector<16x1024xf32>
    %36 = arith.maximumf %33, %35 : vector<16x1024xf32>
    %37 = arith.truncf %36 : vector<16x1024xf32> to vector<16x1024xbf16>
    %c0_24 = arith.constant 0 : index
    %c0_25 = arith.constant 0 : index
    %38 = vector.load %arg10[%c0_24, %c0_25] : memref<1024x128xbf16, #tpu.memory_space<vmem>>, vector<1024x128xbf16>
    %cst_26 = arith.constant dense<0.000000e+00> : vector<16x128xf32>
    %39 = tpu.matmul %37, %38, %cst_26 {dimension_numbers = #tpu.dot_dimension_numbers<[1], [0], [0], [1], [0, 0, 1, 1], [], []>} : vector<16x1024xbf16>, vector<1024x128xbf16>, vector<16x128xf32> -> vector<16x128xf32>
    %c0_27 = arith.constant 0 : index
    %c0_28 = arith.constant 0 : index
    %40 = vector.load %arg11[%c0_27, %c0_28] : memref<1x128xf32, #tpu.memory_space<vmem>>, vector<1x128xf32>
    %41 = vector.broadcast %40 : vector<1x128xf32> to vector<16x128xf32>
    %42 = arith.addf %39, %41 : vector<16x128xf32>
    %cst_29 = arith.constant -1.000000e+00 : f32
    %cst_30 = arith.constant 1.000000e+00 : f32
    %43 = vector.broadcast %cst_29 : f32 to vector<16x128xf32>
    %44 = arith.maximumf %43, %42 : vector<16x128xf32>
    %45 = vector.broadcast %cst_30 : f32 to vector<16x128xf32>
    %46 = arith.minimumf %45, %44 : vector<16x128xf32>
    %c0_31 = arith.constant 0 : index
    %c0_32 = arith.constant 0 : index
    %47 = vector.load %arg12[%c0_31, %c0_32] : memref<16x128xf32, #tpu.memory_space<vmem>>, vector<16x128xf32>
    tpu.vector_store %arg12[%c0_31, %c0_32], %46 {strides = array<i32>} : memref<16x128xf32, #tpu.memory_space<vmem>>, vector<16x128xf32>,
    return
  }
  func.func @transform_0(%arg0: i32) -> (i32, i32) {
    %c0_i32 = arith.constant 0 : i32
    %c0_i32_0 = arith.constant 0 : i32
    return %arg0, %c0_i32 : i32, i32
  }
  func.func @transform_1(%arg0: i32) -> (i32, i32) {
    %c0_i32 = arith.constant 0 : i32
    %c0_i32_0 = arith.constant 0 : i32
    %c0_i32_1 = arith.constant 0 : i32
    return %c0_i32, %c0_i32_0 : i32, i32
  }
  func.func @transform_2(%arg0: i32) -> (i32, i32) {
    %c0_i32 = arith.constant 0 : i32
    %c0_i32_0 = arith.constant 0 : i32
    %c0_i32_1 = arith.constant 0 : i32
    return %c0_i32, %c0_i32_0 : i32, i32
  }
  func.func @transform_3(%arg0: i32) -> (i32, i32) {
    %c0_i32 = arith.constant 0 : i32
    %c0_i32_0 = arith.constant 0 : i32
    %c0_i32_1 = arith.constant 0 : i32
    return %c0_i32, %c0_i32_0 : i32, i32
  }
  func.func @transform_4(%arg0: i32) -> (i32, i32) {
    %c0_i32 = arith.constant 0 : i32
    %c0_i32_0 = arith.constant 0 : i32
    %c0_i32_1 = arith.constant 0 : i32
    return %c0_i32, %c0_i32_0 : i32, i32
  }
  func.func @transform_5(%arg0: i32) -> (i32, i32) {
    %c0_i32 = arith.constant 0 : i32
    %c0_i32_0 = arith.constant 0 : i32
    %c0_i32_1 = arith.constant 0 : i32
    return %c0_i32, %c0_i32_0 : i32, i32
  }
  func.func @transform_6(%arg0: i32) -> (i32, i32) {
    %c0_i32 = arith.constant 0 : i32
    %c0_i32_0 = arith.constant 0 : i32
    %c0_i32_1 = arith.constant 0 : i32
    return %c0_i32, %c0_i32_0 : i32, i32
  }
  func.func @transform_7(%arg0: i32) -> (i32, i32) {
    %c0_i32 = arith.constant 0 : i32
    %c0_i32_0 = arith.constant 0 : i32
    %c0_i32_1 = arith.constant 0 : i32
    return %c0_i32, %c0_i32_0 : i32, i32
  }
  func.func @transform_8(%arg0: i32) -> (i32, i32) {
    %c0_i32 = arith.constant 0 : i32
    %c0_i32_0 = arith.constant 0 : i32
    %c0_i32_1 = arith.constant 0 : i32
    return %c0_i32, %c0_i32_0 : i32, i32
  }
  func.func @transform_9(%arg0: i32) -> (i32, i32) {
    %c0_i32 = arith.constant 0 : i32
    %c0_i32_0 = arith.constant 0 : i32
    %c0_i32_1 = arith.constant 0 : i32
    return %c0_i32, %c0_i32_0 : i32, i32
  }
  func.func @transform_10(%arg0: i32) -> (i32, i32) {
    %c0_i32 = arith.constant 0 : i32
    %c0_i32_0 = arith.constant 0 : i32
    %c0_i32_1 = arith.constant 0 : i32
    return %c0_i32, %c0_i32_0 : i32, i32
  }
  func.func @transform_11(%arg0: i32) -> (i32, i32) {
    %c0_i32 = arith.constant 0 : i32
    %c0_i32_0 = arith.constant 0 : i32
    return %arg0, %c0_i32 : i32, i32
  }
}

</mosaic_0001>

<bundles_post_ra>
// kernel: generator_forward.1
= control target key start
LH: loop header
LB: loop body
LE: loop exit
PB: predicated region body
PF: predicated region fallthrough
CT: control target
= control target key end

     0   :  { %16 = vsyncpa [#allocation3], 0  ;;  %s5492_s20 = smov [#allocation2]   ;;  %s5493_s22 = smov 512   ;;  %s6391_s0 = inlined_call_operand.vmem [shape: f32[16,32], index: 0, kind: input, shape index: {}]   ;;  %s6392_s1 = inlined_call_operand.vmem [shape: bf16[32,128], index: 1, kind: input, shape index: {}]   ;;  %s6393_s2 = inlined_call_operand.vmem [shape: f32[1,128], index: 2, kind: input, shape index: {}]   ;;  %s6394_s3 = inlined_call_operand.vmem [shape: bf16[128,256], index: 3, kind: input, shape index: {}]   ;;  %s6395_s4 = inlined_call_operand.vmem [shape: f32[1,256], index: 4, kind: input, shape index: {}]   ;;  %s6396_s5 = inlined_call_operand.vmem [shape: bf16[256,512], index: 5, kind: input, shape index: {}]   ;;  %s6397_s6 = inlined_call_operand.vmem [shape: f32[1,512], index: 6, kind: input, shape index: {}]   ;;  %s6398_s7 = inlined_call_operand.hbm [shape: bf16[512,1024], index: 7, kind: input, shape index: {}]   ;;  %s6399_s8 = inlined_call_operand.vmem [shape: f32[1,1024], index: 8, kind: input, shape index: {}]   ;;  %s6400_s9 = inlined_call_operand.vmem [shape: bf16[1024,128], index: 9, kind: input, shape index: {}]   ;;  %s6401_s10 = inlined_call_operand.vmem [shape: f32[1,128], index: 10, kind: input, shape index: {}]   ;;  %s6402_s11 = inlined_call_operand.vmem [shape: f32[16,128], index: 11, kind: output, shape index: {}]  }
   0x1   :  { %s35_s19 = sshll.u32 %s6398_s7, 4  ;;  %s37_s21 = sshll.u32 %s5492_s20, 4  ;;  %s36_s19 = int_to_ptr.hbm [resolvable:$true] %s35_s19  ;;  %s38_s21 = int_to_ptr.vmem [resolvable:$true] %s37_s21 }
   0x2   :  { %s5494_s23 = smov 32  }
   0x3   :  { %43 = dma.hbm_to_vmem [thread:$0]  %s36_s19, 32768, %s38_s21, [#allocation3], %s5493_s22, %s5493_s22, %s5494_s23  }
   0x4   :  { %5490 = dma.done.wait [#allocation3], 32768  }
   0x5   :  { %5491 = vsyncadd [#allocation3], 4294934528  ;;  %v5060_v0 = vld [vmem:[%s6392_s1 + $0x8] sm:$0xff]  ;;  %v5059_v1 = vld [vmem:[%s6392_s1] sm:$0xff]  ;;  %vm78_vm0 = vcmask 261120  }
   0x6   :  { %v55_v2 = vld [vmem:[%s6391_s0] sm:$0xff]  ;;  %v56_v3 = vld [vmem:[%s6391_s0 + $0x8] sm:$0xff]  ;;  %v3515_v4 = vld [vmem:[%s6394_s3 + $0x70] sm:$0xf]  ;;  %88 = vmatpush.bf16.msra.mxu0 %v5060_v0 }
   0x7   :  { %v5076_v5 = vld [vmem:[%s6394_s3 + $0x74] sm:$0xf0]  ;;  %v5075_v7 = vld [vmem:[%s6394_s3 + $0x74] sm:$0xf]  ;;  %v3517_v8 = vld [vmem:[%s6394_s3 + $0x78] sm:$0xf0]  ;;  %v57_v15 = vpack.c.bf16 %v56_v3, %v55_v2 }
   0x8   :  { %v3516_v6 = vor.u32 %v5076_v5, %v3515_v4  ;;  %v3507_v9 = vld [vmem:[%s6394_s3 + $0x60] sm:$0xf]  ;;  %v3520_v10 = vor.u32 %v5075_v7, %v3517_v8  ;;  %v5074_v11 = vld [vmem:[%s6394_s3 + $0x64] sm:$0xf0]  ;;  %v5073_v12 = vld [vmem:[%s6394_s3 + $0x64] sm:$0xf] }
   0x9   :  { %v3509_v13 = vld [vmem:[%s6394_s3 + $0x68] sm:$0xf0]  ;;  %v3508_v14 = vor.u32 %v5074_v11, %v3507_v9  ;;  %v3499_v17 = vld [vmem:[%s6394_s3 + $0x50] sm:$0xf]  ;;  %v5072_v18 = vld [vmem:[%s6394_s3 + $0x54] sm:$0xf0] }
   0xa   :  { %203 = vmatpush.bf16.msra.mxu1 %v3516_v6  ;;  %217 = vmatpush.bf16.msra.mxu2 %v3520_v10  ;;  %v3512_v16 = vor.u32 %v5073_v12, %v3509_v13  ;;  %v5071_v19 = vld [vmem:[%s6394_s3 + $0x54] sm:$0xf]  ;;  %v3501_v20 = vld [vmem:[%s6394_s3 + $0x58] sm:$0xf0]  ;;  %v3500_v21 = vor.u32 %v5072_v18, %v3499_v17  ;;  %v3491_v23 = vld [vmem:[%s6394_s3 + $0x40] sm:$0xf] }
   0xb   :  { %89 = vmatpush.bf16.msra.mxu0 %v5059_v1  ;;  %v3504_v22 = vor.u32 %v5071_v19, %v3501_v20  ;;  %v5070_v24 = vld [vmem:[%s6394_s3 + $0x44] sm:$0xf0]  ;;  %v5069_v25 = vld [vmem:[%s6394_s3 + $0x44] sm:$0xf]  ;;  %v3493_v26 = vld [vmem:[%s6394_s3 + $0x48] sm:$0xf0] }
   0xc   :  { %v3492_v27 = vor.u32 %v5070_v24, %v3491_v23  ;;  %v3496_v28 = vor.u32 %v5069_v25, %v3493_v26  ;;  %v3483_v29 = vld [vmem:[%s6394_s3 + $0x30] sm:$0xf]  ;;  %v5068_v30 = vld [vmem:[%s6394_s3 + $0x34] sm:$0xf0]  ;;  %v5067_v31 = vld [vmem:[%s6394_s3 + $0x34] sm:$0xf] }
   0xd   :  { %v3484_v32 = vor.u32 %v5068_v30, %v3483_v29  ;;  %v3485_v33 = vld [vmem:[%s6394_s3 + $0x38] sm:$0xf0]  ;;  %v3475_v35 = vld [vmem:[%s6394_s3 + $0x20] sm:$0xf]  ;;  %v5066_v36 = vld [vmem:[%s6394_s3 + $0x24] sm:$0xf0] }
   0xe   :  { %204 = vmatpush.bf16.msra.mxu1 %v3508_v14  ;;  %3456 = vmatmul.msk.bf16.vlgmr.msra.gmra.mxu0 %vm78_vm0, %v57_v15  ;;  %v3488_v34 = vor.u32 %v5067_v31, %v3485_v33  ;;  %v5065_v37 = vld [vmem:[%s6394_s3 + $0x24] sm:$0xf]  ;;  %v3476_v38 = vor.u32 %v5066_v36, %v3475_v35  ;;  %v3477_v39 = vld [vmem:[%s6394_s3 + $0x28] sm:$0xf0]  ;;  %v3467_v41 = vld [vmem:[%s6394_s3 + $0x10] sm:$0xf] }
   0xf   :  { %218 = vmatpush.bf16.msra.mxu2 %v3512_v16  ;;  %v3480_v40 = vor.u32 %v5065_v37, %v3477_v39  ;;  %v5064_v42 = vld [vmem:[%s6394_s3 + $0x14] sm:$0xf0]  ;;  %v5063_v43 = vld [vmem:[%s6394_s3 + $0x14] sm:$0xf]  ;;  %v3469_v45 = vld [vmem:[%s6394_s3 + $0x18] sm:$0xf0] }
  0x10   :  { %v3468_v44 = vor.u32 %v5064_v42, %v3467_v41  ;;  %v3472_v46 = vor.u32 %v5063_v43, %v3469_v45  ;;  %v3459_v47 = vld [vmem:[%s6394_s3] sm:$0xf]  ;;  %v5062_v48 = vld [vmem:[%s6394_s3 + $0x4] sm:$0xf0]  ;;  %v5061_v49 = vld [vmem:[%s6394_s3 + $0x4] sm:$0xf] }
  0x11   :  { %v3460_v50 = vor.u32 %v5062_v48, %v3459_v47  ;;  %v3461_v51 = vld [vmem:[%s6394_s3 + $0x8] sm:$0xf0]  ;;  %v3635_v53 = vld [vmem:[%s6396_s5 + $0xe0] sm:$0xf]  ;;  %v5107_v54 = vld [vmem:[%s6396_s5 + $0xec] sm:$0xf0] }
  0x12   :  { %205 = vmatpush.bf16.msra.mxu1 %v3500_v21  ;;  %v3464_v52 = vor.u32 %v5061_v49, %v3461_v51  ;;  %v5105_v55 = vld [vmem:[%s6396_s5 + $0xe4] sm:$0xf]  ;;  %v3636_v56 = vor.u32 %v5107_v54, %v3635_v53  ;;  %v3637_v57 = vld [vmem:[%s6396_s5 + $0xf0] sm:$0xf0]  ;;  %v3619_v58 = vld [vmem:[%s6396_s5 + $0xc0] sm:$0xf] }
  0x13   :  { %219 = vmatpush.bf16.msra.mxu2 %v3504_v22  ;;  %v5103_v59 = vld [vmem:[%s6396_s5 + $0xcc] sm:$0xf0]  ;;  %v3640_v60 = vor.u32 %v5105_v55, %v3637_v57  ;;  %v5101_v61 = vld [vmem:[%s6396_s5 + $0xc4] sm:$0xf]  ;;  %v3621_v62 = vld [vmem:[%s6396_s5 + $0xd0] sm:$0xf0] }
  0x14   :  { %v3763_v63 = vld [vmem:[%s6396_s5 + $0x1e0] sm:$0xf]  ;;  %635 = vmatpush.bf16.msra.mxu3 %v3636_v56  ;;  %v3620_v0 = vor.u32 %v5103_v59, %v3619_v58  ;;  %v5139_v1 = vld [vmem:[%s6396_s5 + $0x1ec] sm:$0xf0]  ;;  %v5137_v2 = vld [vmem:[%s6396_s5 + $0x1e4] sm:$0xf]  ;;  %v3624_v4 = vor.u32 %v5101_v61, %v3621_v62 }
  0x15   :  { %v3765_v3 = vld [vmem:[%s6396_s5 + $0x1f0] sm:$0xf0]  ;;  %v3764_v5 = vor.u32 %v5139_v1, %v3763_v63  ;;  %v3603_v7 = vld [vmem:[%s6396_s5 + $0xa0] sm:$0xf]  ;;  %v5099_v8 = vld [vmem:[%s6396_s5 + $0xac] sm:$0xf0] }
  0x16   :  { %206 = vmatpush.bf16.msra.mxu1 %v3492_v27  ;;  %v3768_v6 = vor.u32 %v5137_v2, %v3765_v3  ;;  %v5097_v9 = vld [vmem:[%s6396_s5 + $0xa4] sm:$0xf]  ;;  %v3605_v10 = vld [vmem:[%s6396_s5 + $0xb0] sm:$0xf0]  ;;  %v3747_v11 = vld [vmem:[%s6396_s5 + $0x1c0] sm:$0xf]  ;;  %v3604_v16 = vor.u32 %v5099_v8, %v3603_v7 }
  0x17   :  { %220 = vmatpush.bf16.msra.mxu2 %v3496_v28  ;;  %v5135_v12 = vld [vmem:[%s6396_s5 + $0x1cc] sm:$0xf0]  ;;  %649 = vmatpush.bf16.msrb.mxu0 %v3764_v5  ;;  %v5133_v14 = vld [vmem:[%s6396_s5 + $0x1c4] sm:$0xf]  ;;  %v3749_v15 = vld [vmem:[%s6396_s5 + $0x1d0] sm:$0xf0]  ;;  %v3608_v20 = vor.u32 %v5097_v9, %v3605_v10 }
  0x18   :  { %v3748_v13 = vor.u32 %v5135_v12, %v3747_v11  ;;  %636 = vmatpush.bf16.msra.mxu3 %v3620_v0  ;;  %v3752_v17 = vor.u32 %v5133_v14, %v3749_v15  ;;  %v3587_v18 = vld [vmem:[%s6396_s5 + $0x80] sm:$0xf]  ;;  %v5095_v19 = vld [vmem:[%s6396_s5 + $0x8c] sm:$0xf0]  ;;  %v5129_v23 = vld [vmem:[%s6396_s5 + $0x1a4] sm:$0xf] }
  0x19   :  { %v3731_v21 = vld [vmem:[%s6396_s5 + $0x1a0] sm:$0xf]  ;;  %v5131_v22 = vld [vmem:[%s6396_s5 + $0x1ac] sm:$0xf0]  ;;  %v5093_v24 = vld [vmem:[%s6396_s5 + $0x84] sm:$0xf]  ;;  %v3588_v30 = vor.u32 %v5095_v19, %v3587_v18 }
  0x1a   :  { %207 = vmatpush.bf16.msra.mxu1 %v3484_v32  ;;  %v3589_v25 = vld [vmem:[%s6396_s5 + $0x90] sm:$0xf0]  ;;  %v3732_v27 = vor.u32 %v5131_v22, %v3731_v21  ;;  %v3715_v29 = vld [vmem:[%s6396_s5 + $0x180] sm:$0xf]  ;;  %v5127_v31 = vld [vmem:[%s6396_s5 + $0x18c] sm:$0xf0] }
  0x1b   :  { %221 = vmatpush.bf16.msra.mxu2 %v3488_v34  ;;  %v3733_v26 = vld [vmem:[%s6396_s5 + $0x1b0] sm:$0xf0]  ;;  %650 = vmatpush.bf16.msrb.mxu0 %v3748_v13  ;;  %v5125_v32 = vld [vmem:[%s6396_s5 + $0x184] sm:$0xf]  ;;  %v3592_v34 = vor.u32 %v5093_v24, %v3589_v25  ;;  %v3571_v35 = vld [vmem:[%s6396_s5 + $0x60] sm:$0xf]  ;;  %v3716_v39 = vor.u32 %v5127_v31, %v3715_v29 }
  0x1c   :  { %v3736_v28 = vor.u32 %v5129_v23, %v3733_v26  ;;  %637 = vmatpush.bf16.msra.mxu3 %v3604_v16  ;;  %v3717_v33 = vld [vmem:[%s6396_s5 + $0x190] sm:$0xf0]  ;;  %v5091_v36 = vld [vmem:[%s6396_s5 + $0x6c] sm:$0xf0]  ;;  %v5089_v37 = vld [vmem:[%s6396_s5 + $0x64] sm:$0xf] }
  0x1d   :  { %v3699_v41 = vld [vmem:[%s6396_s5 + $0x160] sm:$0xf]  ;;  %v3572_v43 = vor.u32 %v5091_v36, %v3571_v35  ;;  %v5121_v45 = vld [vmem:[%s6396_s5 + $0x164] sm:$0xf]  ;;  %v5119_v57 = vld [vmem:[%s6396_s5 + $0x14c] sm:$0xf0] }
  0x1e   :  { %208 = vmatpush.bf16.msra.mxu1 %v3476_v38  ;;  %v3573_v38 = vld [vmem:[%s6396_s5 + $0x70] sm:$0xf0]  ;;  %v5464_v47 = vld [vmem:[%s6393_s2] ss:$0 sm:$0xff]  ;;  %v5085_v51 = vld [vmem:[%s6396_s5 + $0x44] sm:$0xf] }
  0x1f   :  { %222 = vmatpush.bf16.msra.mxu2 %v3480_v40  ;;  %651 = vmatpush.bf16.msrb.mxu0 %v3732_v27  ;;  %v3720_v40 = vor.u32 %v5125_v32, %v3717_v33  ;;  %v3576_v48 = vor.u32 %v5089_v37, %v3573_v38  ;;  %v3555_v49 = vld [vmem:[%s6396_s5 + $0x40] sm:$0xf]  ;;  %v5117_v58 = vld [vmem:[%s6396_s5 + $0x144] sm:$0xf]  ;;  %v3685_v59 = vld [vmem:[%s6396_s5 + $0x150] sm:$0xf0] }
  0x20   :  { %638 = vmatpush.bf16.msra.mxu3 %v3588_v30  ;;  %v3683_v55 = vld [vmem:[%s6396_s5 + $0x140] sm:$0xf]  ;;  %v5083_v63 = vld [vmem:[%s6396_s5 + $0x2c] sm:$0xf0]  ;;  %v5081_v0 = vld [vmem:[%s6396_s5 + $0x24] sm:$0xf]  ;;  %v3688_v3 = vor.u32 %v5117_v58, %v3685_v59 }
  0x21   :  { %v3539_v62 = vld [vmem:[%s6396_s5 + $0x20] sm:$0xf]  ;;  %v3541_v1 = vld [vmem:[%s6396_s5 + $0x30] sm:$0xf0]  ;;  %v3684_v2 = vor.u32 %v5119_v57, %v3683_v55  ;;  %v5079_v14 = vld [vmem:[%s6396_s5 + $0xc] sm:$0xf0] }
  0x22   :  { %209 = vmatpush.bf16.msra.mxu1 %v3468_v44  ;;  %v5123_v44 = vld [vmem:[%s6396_s5 + $0x16c] sm:$0xf0]  ;;  %v3540_v5 = vor.u32 %v5083_v63, %v3539_v62  ;;  %v3544_v8 = vor.u32 %v5081_v0, %v3541_v1  ;;  %v3523_v13 = vld [vmem:[%s6396_s5] sm:$0xf]  ;;  %v5077_v15 = vld [vmem:[%s6396_s5 + $0x4] sm:$0xf] }
  0x23   :  { %223 = vmatpush.bf16.msra.mxu2 %v3472_v46  ;;  %v3701_v46 = vld [vmem:[%s6396_s5 + $0x170] sm:$0xf0]  ;;  %652 = vmatpush.bf16.msrb.mxu0 %v3716_v39  ;;  %v3700_v53 = vor.u32 %v5123_v44, %v3699_v41  ;;  %v3524_v16 = vor.u32 %v5079_v14, %v3523_v13  ;;  %v3643_v18 = vld [vmem:[%s6396_s5 + $0xe8] sm:$0xf]  ;;  %v5108_v19 = vld [vmem:[%s6396_s5 + $0xf4] sm:$0xf0] }
  0x24   :  { %v3704_v54 = vor.u32 %v5121_v45, %v3701_v46  ;;  %639 = vmatpush.bf16.msra.mxu3 %v3572_v43  ;;  %v3644_v21 = vor.u32 %v5108_v19, %v3643_v18  ;;  %v5106_v22 = vld [vmem:[%s6396_s5 + $0xec] sm:$0xf]  ;;  %v3645_v23 = vld [vmem:[%s6396_s5 + $0xf8] sm:$0xf0]  ;;  %v3667_v24 = vld [vmem:[%s6396_s5 + $0x120] sm:$0xf] }
  0x25   :  { %v3648_v25 = vor.u32 %v5106_v22, %v3645_v23  ;;  %v5115_v26 = vld [vmem:[%s6396_s5 + $0x12c] sm:$0xf0]  ;;  %v5113_v27 = vld [vmem:[%s6396_s5 + $0x124] sm:$0xf]  ;;  %v3627_v31 = vld [vmem:[%s6396_s5 + $0xc8] sm:$0xf] }
  0x26   :  { %210 = vmatpush.bf16.msra.mxu1 %v3460_v50  ;;  %v5087_v50 = vld [vmem:[%s6396_s5 + $0x4c] sm:$0xf0]  ;;  %v3668_v29 = vor.u32 %v5115_v26, %v3667_v24  ;;  %v5104_v32 = vld [vmem:[%s6396_s5 + $0xd4] sm:$0xf0]  ;;  %v5102_v33 = vld [vmem:[%s6396_s5 + $0xcc] sm:$0xf] }
  0x27   :  { %224 = vmatpush.bf16.msra.mxu2 %v3464_v52  ;;  %v3557_v52 = vld [vmem:[%s6396_s5 + $0x50] sm:$0xf0]  ;;  %v3556_v56 = vor.u32 %v5087_v50, %v3555_v49  ;;  %653 = vmatpush.bf16.msrb.mxu0 %v3700_v53  ;;  %v3629_v35 = vld [vmem:[%s6396_s5 + $0xd8] sm:$0xf0]  ;;  %v3651_v36 = vld [vmem:[%s6396_s5 + $0x100] sm:$0xf] }
  0x28   :  { %v3560_v61 = vor.u32 %v5085_v51, %v3557_v52  ;;  %v5111_v37 = vld [vmem:[%s6396_s5 + $0x10c] sm:$0xf0]  ;;  %v3632_v38 = vor.u32 %v5102_v33, %v3629_v35  ;;  %v3653_v41 = vld [vmem:[%s6396_s5 + $0x110] sm:$0xf0]  ;;  %v3771_v43 = vld [vmem:[%s6396_s5 + $0x1e8] sm:$0xf] }
  0x29   :  { %640 = vmatpush.bf16.msra.mxu3 %v3556_v56  ;;  %v3652_v39 = vor.u32 %v5111_v37, %v3651_v36  ;;  %v5140_v44 = vld [vmem:[%s6396_s5 + $0x1f4] sm:$0xf0]  ;;  %v5138_v45 = vld [vmem:[%s6396_s5 + $0x1ec] sm:$0xf]  ;;  %v3613_v53 = vld [vmem:[%s6396_s5 + $0xb8] sm:$0xf0] }
  0x2a   :  { %663 = vmatpush.bf16.msrb.mxu1 %v3640_v60  ;;  %v3772_v46 = vor.u32 %v5140_v44, %v3771_v43  ;;  %v5100_v49 = vld [vmem:[%s6396_s5 + $0xb4] sm:$0xf0]  ;;  %v5098_v52 = vld [vmem:[%s6396_s5 + $0xac] sm:$0xf]  ;;  %v3755_v55 = vld [vmem:[%s6396_s5 + $0x1c8] sm:$0xf] }
  0x2b   :  { %677 = vmatpush.bf16.msrb.mxu2 %v3768_v6  ;;  %654 = vmatpush.bf16.msrb.mxu0 %v3684_v2  ;;  %v5136_v56 = vld [vmem:[%s6396_s5 + $0x1d4] sm:$0xf0]  ;;  %v5134_v57 = vld [vmem:[%s6396_s5 + $0x1cc] sm:$0xf]  ;;  %v3757_v59 = vld [vmem:[%s6396_s5 + $0x1d8] sm:$0xf0] }
  0x2c   :  { %v3756_v58 = vor.u32 %v5136_v56, %v3755_v55  ;;  %v5096_v62 = vld [vmem:[%s6396_s5 + $0x94] sm:$0xf0]  ;;  %v5094_v63 = vld [vmem:[%s6396_s5 + $0x8c] sm:$0xf]  ;;  %v3597_v1 = vld [vmem:[%s6396_s5 + $0x98] sm:$0xf0] }
  0x2d   :  { %641 = vmatpush.bf16.msra.mxu3 %v3540_v5  ;;  %v3600_v2 = vor.u32 %v5094_v63, %v3597_v1  ;;  %v5130_v5 = vld [vmem:[%s6396_s5 + $0x1ac] sm:$0xf]  ;;  %v3581_v13 = vld [vmem:[%s6396_s5 + $0x78] sm:$0xf0]  ;;  %v5088_v22 = vld [vmem:[%s6396_s5 + $0x54] sm:$0xf0] }
  0x2e   :  { %664 = vmatpush.bf16.msrb.mxu1 %v3624_v4  ;;  %v3725_v19 = vld [vmem:[%s6396_s5 + $0x198] sm:$0xf0]  ;;  %v5086_v23 = vld [vmem:[%s6396_s5 + $0x4c] sm:$0xf]  ;;  %v3547_v33 = vld [vmem:[%s6396_s5 + $0x28] sm:$0xf] }
  0x2f   :  { %678 = vmatpush.bf16.msrb.mxu2 %v3752_v17  ;;  %v3525_v17 = vld [vmem:[%s6396_s5 + $0x10] sm:$0xf0]  ;;  %655 = vmatpush.bf16.msrb.mxu0 %v3668_v29  ;;  %v5122_v29 = vld [vmem:[%s6396_s5 + $0x16c] sm:$0xf]  ;;  %v3549_v37 = vld [vmem:[%s6396_s5 + $0x38] sm:$0xf0] }
  0x30   :  { %v5082_v35 = vld [vmem:[%s6396_s5 + $0x2c] sm:$0xf]  ;;  %v3693_v43 = vld [vmem:[%s6396_s5 + $0x158] sm:$0xf0]  ;;  %v3531_v44 = vld [vmem:[%s6396_s5 + $0x8] sm:$0xf] }
  0x31   :  { %642 = vmatpush.bf16.msra.mxu3 %v3524_v16  ;;  %v5128_v16 = vld [vmem:[%s6396_s5 + $0x194] sm:$0xf0]  ;;  %v117_v55 = vld [vmem:[%s6395_s4] sm:$0x3] }
  0x32   :  { %665 = vmatpush.bf16.msrb.mxu1 %v3608_v20  ;;  %v3528_v20 = vor.u32 %v5077_v15, %v3525_v17  ;;  %v3723_v15 = vld [vmem:[%s6396_s5 + $0x188] sm:$0xf]  ;;  %v5126_v17 = vld [vmem:[%s6396_s5 + $0x18c] sm:$0xf] }
  0x33   :  { %679 = vmatpush.bf16.msrb.mxu2 %v3736_v28  ;;  %v3669_v28 = vld [vmem:[%s6396_s5 + $0x130] sm:$0xf0]  ;;  %656 = vmatpush.bf16.msrb.mxu0 %v3652_v39  ;;  %v3724_v18 = vor.u32 %v5128_v16, %v3723_v15  ;;  %v5120_v39 = vld [vmem:[%s6396_s5 + $0x154] sm:$0xf0] }
  0x34   :  { %v3672_v30 = vor.u32 %v5113_v27, %v3669_v28  ;;  %v3707_v27 = vld [vmem:[%s6396_s5 + $0x168] sm:$0xf]  ;;  %v5124_v28 = vld [vmem:[%s6396_s5 + $0x174] sm:$0xf0] }
  0x35   :  { %691 = vmatpush.bf16.msrb.mxu3 %v3644_v21  ;;  %v3563_v21 = vld [vmem:[%s6396_s5 + $0x48] sm:$0xf] }
  0x36   :  { %666 = vmatpush.bf16.msrb.mxu1 %v3592_v34  ;;  %v3628_v34 = vor.u32 %v5104_v32, %v3627_v31  ;;  %v3564_v24 = vor.u32 %v5088_v22, %v3563_v21  ;;  %v3709_v31 = vld [vmem:[%s6396_s5 + $0x178] sm:$0xf0]  ;;  %v5193_v22 = vld [vmem:[#allocation2 + $0x19c] sm:$0xf0] }
  0x37   :  { %680 = vmatpush.bf16.msrb.mxu2 %v3720_v40  ;;  %v5109_v40 = vld [vmem:[%s6396_s5 + $0x104] sm:$0xf]  ;;  %705 = vmatpush.bf16.msra.mxu0 %v3772_v46  ;;  %v3712_v32 = vor.u32 %v5122_v29, %v3709_v31  ;;  %v5080_v46 = vld [vmem:[%s6396_s5 + $0x14] sm:$0xf0]  ;;  %v4771_v29 = vld [vmem:[#allocation2 + $0x7c0] sm:$0xf] }
  0x39   :  { %692 = vmatpush.bf16.msrb.mxu3 %v3628_v34  ;;  %v5084_v34 = vld [vmem:[%s6396_s5 + $0x34] sm:$0xf0] }
  0x3a   :  { %667 = vmatpush.bf16.msrb.mxu1 %v3576_v48  ;;  %v3611_v48 = vld [vmem:[%s6396_s5 + $0xa8] sm:$0xf]  ;;  %v3548_v36 = vor.u32 %v5084_v34, %v3547_v33 }
  0x3b   :  { %681 = vmatpush.bf16.msrb.mxu2 %v3704_v54  ;;  %v3612_v51 = vor.u32 %v5100_v49, %v3611_v48  ;;  %v3616_v54 = vor.u32 %v5098_v52, %v3613_v53  ;;  %706 = vmatpush.bf16.msra.mxu0 %v3756_v58  ;;  %v3533_v48 = vld [vmem:[%s6396_s5 + $0x18] sm:$0xf0]  ;;  %v3532_v49 = vor.u32 %v5080_v46, %v3531_v44  ;;  %v5116_v52 = vld [vmem:[%s6396_s5 + $0x134] sm:$0xf0]  ;;  %v5114_v53 = vld [vmem:[%s6396_s5 + $0x12c] sm:$0xf] }
  0x3c   :  { %v119_v58 = vperm.slane %v117_v55, 0  ;;  %v4739_v44 = vld [vmem:[#allocation2 + $0x780] sm:$0xf] }
  0x3d   :  { %693 = vmatpush.bf16.msrb.mxu3 %v3612_v51  ;;  %v3675_v51 = vld [vmem:[%s6396_s5 + $0x128] sm:$0xf] }
  0x3e   :  { %668 = vmatpush.bf16.msrb.mxu1 %v3560_v61  ;;  %v3595_v61 = vld [vmem:[%s6396_s5 + $0x88] sm:$0xf]  ;;  %v3676_v56 = vor.u32 %v5116_v52, %v3675_v51  ;;  %v5305_v51 = vld [vmem:[#allocation2 + $0x51c] sm:$0xf0] }
  0x3f   :  { %682 = vmatpush.bf16.msrb.mxu2 %v3688_v3  ;;  %v3596_v0 = vor.u32 %v5096_v62, %v3595_v61  ;;  %v3739_v3 = vld [vmem:[%s6396_s5 + $0x1a8] sm:$0xf]  ;;  %v5112_v61 = vld [vmem:[%s6396_s5 + $0x114] sm:$0xf0]  ;;  %v5110_v62 = vld [vmem:[%s6396_s5 + $0x10c] sm:$0xf] }
  0x41   :  { %694 = vmatpush.bf16.msrb.mxu3 %v3596_v0  ;;  %v3661_v0 = vld [vmem:[%s6396_s5 + $0x118] sm:$0xf0] }
  0x42   :  { %669 = vmatpush.bf16.msrb.mxu1 %v3544_v8  ;;  %v3664_v1 = vor.u32 %v5110_v62, %v3661_v0  ;;  %v4387_v62 = vld [vmem:[#allocation2 + $0x4c0] sm:$0xf] }
  0x43   :  { %683 = vmatpush.bf16.msrb.mxu2 %v3672_v30  ;;  %v3708_v30 = vor.u32 %v5124_v28, %v3707_v27  ;;  %v5321_v27 = vld [vmem:[#allocation2 + $0x59c] sm:$0xf0] }
  0x46   :  { %670 = vmatpush.bf16.msrb.mxu1 %v3528_v20  ;;  %v3728_v20 = vor.u32 %v5126_v17, %v3725_v19  ;;  %v3971_v17 = vld [vmem:[#allocation2 + $0x180] sm:$0xf] }
  0x47   :  { %v3972_v31 = vor.u32 %v5193_v22, %v3971_v17  ;;  %v3779_v22 = vld [vmem:[#allocation2] sm:$0xf] }
  0x8b   :  { %v91_v42 = vpop.f32.mrf.mxu0 }
  0x8c   :  { %v92_v60 = vadd.f32 %v5464_v47, %v91_v42  ;;  %v3656_v42 = vor.u32 %v5109_v40, %v3653_v41  ;;  %v3552_v40 = vor.u32 %v5082_v35, %v3549_v37  ;;  %v4451_v37 = vld [vmem:[#allocation2 + $0x540] sm:$0xf] }
  0x8e   :  { %v96_v6 = vmul.f32 0.2, %v92_v60  ;;  %684 = vmatpush.bf16.msrb.mxu2 %v3656_v42  ;;  %v5118_v42 = vld [vmem:[%s6396_s5 + $0x14c] sm:$0xf] }
  0x90   :  { %v98_v10 = vmax.f32 %v92_v60, %v96_v6  ;;  %v3760_v60 = vor.u32 %v5134_v57, %v3757_v59 }
  0x93   :  { %v93_v4 = vpop.f32.mrf.mxu0 }
  0x94   :  { %v94_v7 = vadd.f32 %v5464_v47, %v93_v4  ;;  %v3773_v47 = vld [vmem:[%s6396_s5 + $0x1f8] sm:$0xf0]  ;;  %v5132_v4 = vld [vmem:[%s6396_s5 + $0x1b4] sm:$0xf0] }
  0x95   :  { %v3776_v50 = vor.u32 %v5138_v45, %v3773_v47  ;;  %v3740_v6 = vor.u32 %v5132_v4, %v3739_v3  ;;  %v3696_v45 = vor.u32 %v5118_v42, %v3693_v43  ;;  %v5078_v47 = vld [vmem:[%s6396_s5 + $0xc] sm:$0xf]  ;;  %v120_v4 = vperm.slane %v117_v55, 1  ;;  %v5257_v43 = vld [vmem:[#allocation2 + $0x39c] sm:$0xf0] }
  0x96   :  { %v97_v9 = vmul.f32 0.2, %v94_v7  ;;  %v5249_v55 = vld [vmem:[#allocation2 + $0x35c] sm:$0xf0] }
  0x97   :  { %707 = vmatpush.bf16.msra.mxu0 %v3740_v6 }
  0x98   :  { %v99_v11 = vmax.f32 %v94_v7, %v97_v9  ;;  %v3741_v7 = vld [vmem:[%s6396_s5 + $0x1b8] sm:$0xf0]  ;;  %v3579_v9 = vld [vmem:[%s6396_s5 + $0x68] sm:$0xf] }
  0x99   :  { %v3744_v8 = vor.u32 %v5130_v5, %v3741_v7 }
  0x9a   :  { %v100_v12 = vpack.c.bf16 %v99_v11, %v98_v10  ;;  %v5092_v10 = vld [vmem:[%s6396_s5 + $0x74] sm:$0xf0]  ;;  %v5090_v11 = vld [vmem:[%s6396_s5 + $0x6c] sm:$0xf] }
  0x9b   :  { %v3584_v14 = vor.u32 %v5090_v11, %v3581_v13  ;;  %708 = vmatpush.bf16.msra.mxu0 %v3724_v18  ;;  %v5201_v11 = vld [vmem:[#allocation2 + $0x1dc] sm:$0xf0] }
  0x9c   :  { %211 = vmatmul.bf16.vlgmr.msra.gmra.mxu1 %v100_v12  ;;  %225 = vmatmul.bf16.vlgmr.msra.gmra.mxu2 %v100_v12  ;;  %v3580_v12 = vor.u32 %v5092_v10, %v3579_v9  ;;  %v4003_v10 = vld [vmem:[#allocation2 + $0x1c0] sm:$0xf] }
  0x9d   :  { %719 = vmatpush.bf16.msra.mxu1 %v3648_v25  ;;  %733 = vmatpush.bf16.msra.mxu2 %v3776_v50  ;;  %v3565_v25 = vld [vmem:[%s6396_s5 + $0x58] sm:$0xf0]  ;;  %v3536_v50 = vor.u32 %v5078_v47, %v3533_v48  ;;  %v4004_v16 = vor.u32 %v5201_v11, %v4003_v10  ;;  %v5329_v18 = vld [vmem:[#allocation2 + $0x5dc] sm:$0xf0] }
  0x9e   :  { %695 = vmatpush.bf16.msrb.mxu3 %v3580_v12  ;;  %v3568_v26 = vor.u32 %v5086_v23, %v3565_v25  ;;  %v4259_v25 = vld [vmem:[#allocation2 + $0x3c0] sm:$0xf] }
  0x9f   :  { %709 = vmatpush.bf16.msra.mxu0 %v3708_v30  ;;  %v5393_v30 = vld [vmem:[#allocation2 + $0x7dc] sm:$0xf0] }
  0xa0   :  { %v3907_v47 = vld [vmem:[#allocation2 + $0x100] sm:$0xf] }
  0xa1   :  { %720 = vmatpush.bf16.msra.mxu1 %v3632_v38  ;;  %734 = vmatpush.bf16.msra.mxu2 %v3760_v60  ;;  %v3691_v38 = vld [vmem:[%s6396_s5 + $0x148] sm:$0xf] }
  0xa2   :  { %696 = vmatpush.bf16.msrb.mxu3 %v3564_v24  ;;  %v3692_v41 = vor.u32 %v5120_v39, %v3691_v38  ;;  %v3659_v60 = vld [vmem:[%s6396_s5 + $0x108] sm:$0xf]  ;;  %v4483_v24 = vld [vmem:[#allocation2 + $0x580] sm:$0xf] }
  0xa3   :  { %v3660_v63 = vor.u32 %v5112_v61, %v3659_v60  ;;  %v4484_v33 = vor.u32 %v5321_v27, %v4483_v24  ;;  %v5313_v38 = vld [vmem:[#allocation2 + $0x55c] sm:$0xf0]  ;;  %v5197_v24 = vld [vmem:[#allocation2 + $0x1c4] sm:$0xf] }
  0xa4   :  { %710 = vmatpush.bf16.msra.mxu0 %v3692_v41  ;;  %v4772_v41 = vor.u32 %v5393_v30, %v4771_v29  ;;  %v4452_v48 = vor.u32 %v5313_v38, %v4451_v37  ;;  %v5169_v61 = vld [vmem:[#allocation2 + $0xdc] sm:$0xf0]  ;;  %v4261_v38 = vld [vmem:[#allocation2 + $0x3e0] sm:$0xf0] }
  0xa5   :  { %721 = vmatpush.bf16.msra.mxu1 %v3616_v54  ;;  %735 = vmatpush.bf16.msra.mxu2 %v3744_v8  ;;  %v3677_v54 = vld [vmem:[%s6396_s5 + $0x138] sm:$0xf0]  ;;  %v5217_v27 = vld [vmem:[#allocation2 + $0x25c] sm:$0xf0] }
  0xa6   :  { %697 = vmatpush.bf16.msrb.mxu3 %v3548_v36  ;;  %v3680_v57 = vor.u32 %v5114_v53, %v3677_v54  ;;  %v5185_v36 = vld [vmem:[#allocation2 + $0x15c] sm:$0xf0] }
  0xa7   :  { %v4195_v53 = vld [vmem:[#allocation2 + $0x340] sm:$0xf] }
  0xa8   :  { %711 = vmatpush.bf16.msra.mxu0 %v3676_v56  ;;  %v4707_v56 = vld [vmem:[#allocation2 + $0x740] sm:$0xf]  ;;  %v4196_v0 = vor.u32 %v5249_v55, %v4195_v53 }
  0xa9   :  { %722 = vmatpush.bf16.msra.mxu1 %v3600_v2  ;;  %736 = vmatpush.bf16.msra.mxu2 %v3728_v20  ;;  %v5281_v53 = vld [vmem:[#allocation2 + $0x45c] sm:$0xf0] }
  0xaa   :  { %698 = vmatpush.bf16.msrb.mxu3 %v3532_v49  ;;  %v5177_v49 = vld [vmem:[#allocation2 + $0x11c] sm:$0xf0] }
  0xac   :  { %712 = vmatpush.bf16.msra.mxu0 %v3660_v63  ;;  %v5297_v63 = vld [vmem:[#allocation2 + $0x4dc] sm:$0xf0] }
  0xad   :  { %723 = vmatpush.bf16.msra.mxu1 %v3584_v14  ;;  %737 = vmatpush.bf16.msra.mxu2 %v3712_v32  ;;  %v4515_v14 = vld [vmem:[#allocation2 + $0x5c0] sm:$0xf] }
  0xae   :  { %v4516_v23 = vor.u32 %v5329_v18, %v4515_v14  ;;  %v3939_v32 = vld [vmem:[#allocation2 + $0x140] sm:$0xf] }
  0xaf   :  { %v3940_v46 = vor.u32 %v5185_v36, %v3939_v32  ;;  %v4099_v18 = vld [vmem:[#allocation2 + $0x280] sm:$0xf]  ;;  %v5261_v36 = vld [vmem:[#allocation2 + $0x3c4] sm:$0xf] }
  0xb0   :  { %v5209_v32 = vld [vmem:[#allocation2 + $0x21c] sm:$0xf0] }
  0xb1   :  { %724 = vmatpush.bf16.msra.mxu1 %v3568_v26  ;;  %738 = vmatpush.bf16.msra.mxu2 %v3696_v45  ;;  %v5265_v26 = vld [vmem:[#allocation2 + $0x3dc] sm:$0xf0] }
  0xb2   :  { %v4260_v39 = vor.u32 %v5265_v26, %v4259_v25  ;;  %v5385_v45 = vld [vmem:[#allocation2 + $0x79c] sm:$0xf0]  ;;  %v4005_v25 = vld [vmem:[#allocation2 + $0x1e0] sm:$0xf0] }
  0xb3   :  { %v4740_v54 = vor.u32 %v5385_v45, %v4739_v44  ;;  %v4067_v26 = vld [vmem:[#allocation2 + $0x240] sm:$0xf]  ;;  %v4008_v29 = vor.u32 %v5197_v24, %v4005_v25  ;;  %v5181_v45 = vld [vmem:[#allocation2 + $0x144] sm:$0xf] }
  0xb4   :  { %v4068_v30 = vor.u32 %v5217_v27, %v4067_v26  ;;  %v5361_v44 = vld [vmem:[#allocation2 + $0x6dc] sm:$0xf0]  ;;  %v4485_v24 = vld [vmem:[#allocation2 + $0x5a0] sm:$0xf0] }
  0xb5   :  { %725 = vmatpush.bf16.msra.mxu1 %v3552_v40  ;;  %739 = vmatpush.bf16.msra.mxu2 %v3680_v57  ;;  %v4227_v40 = vld [vmem:[#allocation2 + $0x380] sm:$0xf]  ;;  %v5389_v27 = vld [vmem:[#allocation2 + $0x7c4] sm:$0xf] }
  0xb6   :  { %v4228_v52 = vor.u32 %v5257_v43, %v4227_v40  ;;  %v5377_v57 = vld [vmem:[#allocation2 + $0x75c] sm:$0xf0] }
  0xb7   :  { %v4355_v40 = vld [vmem:[#allocation2 + $0x480] sm:$0xf] }
  0xb9   :  { %726 = vmatpush.bf16.msra.mxu1 %v3536_v50  ;;  %740 = vmatpush.bf16.msra.mxu2 %v3664_v1  ;;  %v4419_v50 = vld [vmem:[#allocation2 + $0x500] sm:$0xf] }
  0xba   :  { %v4420_v60 = vor.u32 %v5305_v51, %v4419_v50  ;;  %v4163_v1 = vld [vmem:[#allocation2 + $0x300] sm:$0xf]  ;;  %v4229_v50 = vld [vmem:[#allocation2 + $0x3a0] sm:$0xf0] }
 0x119   :  { %v212_v59 = vpop.f32.mrf.mxu1 }
 0x11a   :  { %v213_v2 = vadd.f32 %v212_v59, %v119_v58  ;;  %v3875_v59 = vld [vmem:[#allocation2 + $0xc0] sm:$0xf] }
 0x11c   :  { %v231_v6 = vmul.f32 0.2, %v213_v2 }
 0x11e   :  { %v235_v12 = vmax.f32 %v213_v2, %v231_v6  ;;  %v4708_v2 = vor.u32 %v5377_v57, %v4707_v56  ;;  %v3876_v6 = vor.u32 %v5169_v61, %v3875_v59  ;;  %v5353_v56 = vld [vmem:[#allocation2 + $0x69c] sm:$0xf0]  ;;  %v5173_v57 = vld [vmem:[#allocation2 + $0x104] sm:$0xf] }
 0x11f   :  { %v226_v3 = vpop.f32.mrf.mxu2  ;;  %v5245_v61 = vld [vmem:[#allocation2 + $0x344] sm:$0xf] }
 0x120   :  { %v227_v8 = vadd.f32 %v226_v3, %v120_v4  ;;  %v5241_v3 = vld [vmem:[#allocation2 + $0x31c] sm:$0xf0] }
 0x121   :  { %v214_v5 = vpop.f32.mrf.mxu1  ;;  %v4164_v10 = vor.u32 %v5241_v3, %v4163_v1  ;;  %v5273_v1 = vld [vmem:[#allocation2 + $0x41c] sm:$0xf0] }
 0x122   :  { %v215_v7 = vadd.f32 %v214_v5, %v119_v58  ;;  %v232_v19 = vmul.f32 0.2, %v227_v8  ;;  %v3908_v58 = vor.u32 %v5177_v49, %v3907_v47  ;;  %v5369_v5 = vld [vmem:[#allocation2 + $0x71c] sm:$0xf0]  ;;  %v5253_v49 = vld [vmem:[#allocation2 + $0x384] sm:$0xf] }
 0x123   :  { %v4232_v51 = vor.u32 %v5253_v49, %v4229_v50  ;;  %v4421_v49 = vld [vmem:[#allocation2 + $0x520] sm:$0xf0] }
 0x124   :  { %v233_v9 = vmul.f32 0.2, %v215_v7  ;;  %v236_v34 = vmax.f32 %v227_v8, %v232_v19  ;;  %v3843_v8 = vld [vmem:[#allocation2 + $0x80] sm:$0xf]  ;;  %v5373_v50 = vld [vmem:[#allocation2 + $0x744] sm:$0xf] }
 0x125   :  { %v5225_v19 = vld [vmem:[#allocation2 + $0x29c] sm:$0xf0] }
 0x126   :  { %v237_v13 = vmax.f32 %v215_v7, %v233_v9  ;;  %v4388_v7 = vor.u32 %v5297_v63, %v4387_v62  ;;  %v5161_v9 = vld [vmem:[#allocation2 + $0x9c] sm:$0xf0]  ;;  %v4197_v62 = vld [vmem:[#allocation2 + $0x360] sm:$0xf0] }
 0x127   :  { %v228_v15 = vpop.f32.mrf.mxu2  ;;  %v3844_v14 = vor.u32 %v5161_v9, %v3843_v8  ;;  %v4200_v63 = vor.u32 %v5245_v61, %v4197_v62  ;;  %v5237_v9 = vld [vmem:[#allocation2 + $0x304] sm:$0xf] }
 0x128   :  { %v6056_v20 = vpack.c.bf16 %v237_v13, %v235_v12  ;;  %v229_v21 = vadd.f32 %v228_v15, %v120_v4  ;;  %v4675_v4 = vld [vmem:[#allocation2 + $0x700] sm:$0xf] }
 0x129   :  { %v4676_v11 = vor.u32 %v5369_v5, %v4675_v4  ;;  %v4131_v12 = vld [vmem:[#allocation2 + $0x2c0] sm:$0xf]  ;;  %v5165_v5 = vld [vmem:[#allocation2 + $0xc4] sm:$0xf] }
 0x12a   :  { %v234_v28 = vmul.f32 0.2, %v229_v21  ;;  %643 = vmatmul.bf16.vlgmr.msra.gmra.mxu3 %v6056_v20  ;;  %671 = vmatmul.bf16.vlgmr.msrb.gmra.mxu1 %v6056_v20  ;;  %v5233_v13 = vld [vmem:[#allocation2 + $0x2dc] sm:$0xf0] }
 0x12b   :  { %2321 = vmatpush.bf16.msra.mxu3 %v4004_v16  ;;  %2349 = vmatpush.bf16.msrb.mxu1 %v4516_v23  ;;  %v3811_v15 = vld [vmem:[#allocation2 + $0x40] sm:$0xf]  ;;  %v4132_v17 = vor.u32 %v5233_v13, %v4131_v12  ;;  %v4100_v23 = vor.u32 %v5225_v19, %v4099_v18  ;;  %v4517_v13 = vld [vmem:[#allocation2 + $0x5e0] sm:$0xf0] }
 0x12c   :  { %v238_v35 = vmax.f32 %v229_v21, %v234_v28  ;;  %v5153_v16 = vld [vmem:[#allocation2 + $0x5c] sm:$0xf0]  ;;  %v5157_v18 = vld [vmem:[#allocation2 + $0x84] sm:$0xf] }
 0x12d   :  { %v3812_v21 = vor.u32 %v5153_v16, %v3811_v15  ;;  %v5345_v4 = vld [vmem:[#allocation2 + $0x65c] sm:$0xf0]  ;;  %v3845_v19 = vld [vmem:[#allocation2 + $0xa0] sm:$0xf0] }
 0x12e   :  { %v6060_v42 = vpack.c.bf16 %v238_v35, %v236_v34  ;;  %v5189_v34 = vld [vmem:[#allocation2 + $0x184] sm:$0xf]  ;;  %v4547_v15 = vld [vmem:[#allocation2 + $0x600] sm:$0xf] }
 0x12f   :  { %2322 = vmatpush.bf16.msra.mxu3 %v3972_v31  ;;  %2350 = vmatpush.bf16.msrb.mxu1 %v4484_v33  ;;  %v4035_v31 = vld [vmem:[#allocation2 + $0x200] sm:$0xf]  ;;  %v3973_v35 = vld [vmem:[#allocation2 + $0x1a0] sm:$0xf0] }
 0x130   :  { %657 = vmatmul.bf16.vlgmr.msrb.gmra.mxu0 %v6060_v42  ;;  %685 = vmatmul.bf16.vlgmr.msrb.gmra.mxu2 %v6060_v42  ;;  %v4036_v33 = vor.u32 %v5209_v32, %v4035_v31  ;;  %v3976_v37 = vor.u32 %v5189_v34, %v3973_v35  ;;  %v5337_v16 = vld [vmem:[#allocation2 + $0x61c] sm:$0xf0]  ;;  %v3813_v31 = vld [vmem:[#allocation2 + $0x60] sm:$0xf0] }
 0x131   :  { %2335 = vmatpush.bf16.msrb.mxu0 %v4260_v39  ;;  %2363 = vmatpush.bf16.msrb.mxu2 %v4772_v41  ;;  %v4264_v39 = vor.u32 %v5261_v36, %v4261_v38  ;;  %v5289_v41 = vld [vmem:[#allocation2 + $0x49c] sm:$0xf0]  ;;  %v5221_v32 = vld [vmem:[#allocation2 + $0x284] sm:$0xf] }
 0x132   :  { %v4356_v43 = vor.u32 %v5289_v41, %v4355_v40  ;;  %v4101_v34 = vld [vmem:[#allocation2 + $0x2a0] sm:$0xf0] }
 0x133   :  { %2323 = vmatpush.bf16.msra.mxu3 %v3940_v46  ;;  %2351 = vmatpush.bf16.msrb.mxu1 %v4452_v48  ;;  %v3941_v46 = vld [vmem:[#allocation2 + $0x160] sm:$0xf0] }
 0x134   :  { %v3944_v48 = vor.u32 %v5181_v45, %v3941_v46  ;;  %v5309_v35 = vld [vmem:[#allocation2 + $0x544] sm:$0xf] }
 0x135   :  { %2336 = vmatpush.bf16.msrb.mxu0 %v4228_v52  ;;  %2364 = vmatpush.bf16.msrb.mxu2 %v4740_v54  ;;  %v4323_v52 = vld [vmem:[#allocation2 + $0x440] sm:$0xf]  ;;  %v4453_v36 = vld [vmem:[#allocation2 + $0x560] sm:$0xf0] }
 0x136   :  { %v4611_v54 = vld [vmem:[#allocation2 + $0x680] sm:$0xf]  ;;  %v4324_v55 = vor.u32 %v5281_v53, %v4323_v52  ;;  %v4456_v38 = vor.u32 %v5309_v35, %v4453_v36  ;;  %v4741_v40 = vld [vmem:[#allocation2 + $0x7a0] sm:$0xf0] }
 0x137   :  { %2324 = vmatpush.bf16.msra.mxu3 %v3908_v58  ;;  %2352 = vmatpush.bf16.msrb.mxu1 %v4420_v60  ;;  %v3909_v58 = vld [vmem:[#allocation2 + $0x120] sm:$0xf0]  ;;  %v4612_v59 = vor.u32 %v5353_v56, %v4611_v54 }
 0x138   :  { %v3912_v60 = vor.u32 %v5173_v57, %v3909_v58  ;;  %v5213_v45 = vld [vmem:[#allocation2 + $0x244] sm:$0xf] }
 0x139   :  { %2337 = vmatpush.bf16.msrb.mxu0 %v4196_v0  ;;  %2365 = vmatpush.bf16.msrb.mxu2 %v4708_v2  ;;  %v4291_v0 = vld [vmem:[#allocation2 + $0x400] sm:$0xf]  ;;  %v4069_v46 = vld [vmem:[#allocation2 + $0x260] sm:$0xf0] }
 0x13a   :  { %699 = vmatmul.bf16.vlgmr.msrb.gmra.mxu3 %v6056_v20  ;;  %727 = vmatmul.bf16.vlgmr.msra.gmra.mxu1 %v6056_v20  ;;  %v5145_v20 = vld [vmem:[#allocation2 + $0x1c] sm:$0xf0]  ;;  %v4292_v3 = vor.u32 %v5273_v1, %v4291_v0  ;;  %v5205_v54 = vld [vmem:[#allocation2 + $0x204] sm:$0xf] }
 0x13b   :  { %2325 = vmatpush.bf16.msra.mxu3 %v3876_v6  ;;  %2353 = vmatpush.bf16.msrb.mxu1 %v4388_v7  ;;  %v3780_v28 = vor.u32 %v5145_v20, %v3779_v22  ;;  %v4579_v2 = vld [vmem:[#allocation2 + $0x640] sm:$0xf]  ;;  %v3877_v6 = vld [vmem:[#allocation2 + $0xe0] sm:$0xf0]  ;;  %v3848_v22 = vor.u32 %v5157_v18, %v3845_v19 }
 0x13c   :  { %v4580_v7 = vor.u32 %v5345_v4, %v4579_v2  ;;  %v3880_v8 = vor.u32 %v5165_v5, %v3877_v6  ;;  %v4133_v20 = vld [vmem:[#allocation2 + $0x2e0] sm:$0xf0] }
 0x13d   :  { %2338 = vmatpush.bf16.msrb.mxu0 %v4164_v10  ;;  %2366 = vmatpush.bf16.msrb.mxu2 %v4676_v11  ;;  %v4165_v10 = vld [vmem:[#allocation2 + $0x320] sm:$0xf0] }
 0x13e   :  { %v5325_v11 = vld [vmem:[#allocation2 + $0x5c4] sm:$0xf]  ;;  %v4168_v12 = vor.u32 %v5237_v9, %v4165_v10 }
 0x13f   :  { %2326 = vmatpush.bf16.msra.mxu3 %v3844_v14  ;;  %2354 = vmatpush.bf16.msrb.mxu1 %v4356_v43  ;;  %v4520_v14 = vor.u32 %v5325_v11, %v4517_v13  ;;  %v3781_v43 = vld [vmem:[#allocation2 + $0x20] sm:$0xf0]  ;;  %v6071_v11 = vld [vmem:[%s6397_s6] sm:$0xf] }
 0x140   :  { %713 = vmatmul.bf16.vlgmr.msra.gmra.mxu0 %v6060_v42  ;;  %741 = vmatmul.bf16.vlgmr.msra.gmra.mxu2 %v6060_v42  ;;  %v4643_v42 = vld [vmem:[#allocation2 + $0x6c0] sm:$0xf]  ;;  %v5293_v56 = vld [vmem:[#allocation2 + $0x4c4] sm:$0xf]  ;;  %v307_v13 = vperm.slane %v6071_v11, 0 }
 0x141   :  { %2339 = vmatpush.bf16.msrb.mxu0 %v4132_v17  ;;  %v4644_v47 = vor.u32 %v5361_v44, %v4643_v42  ;;  %v4548_v17 = vor.u32 %v5337_v16, %v4547_v15  ;;  %v5141_v42 = vld [vmem:[#allocation2 + $0x4] sm:$0xf] }
 0x142   :  { %v3784_v44 = vor.u32 %v5141_v42, %v3781_v43  ;;  %v4389_v58 = vld [vmem:[#allocation2 + $0x4e0] sm:$0xf0]  ;;  %v309_v42 = vperm.slane %v6071_v11, 2 }
 0x143   :  { %2327 = vmatpush.bf16.msra.mxu3 %v3812_v21  ;;  %2367 = vmatpush.bf16.msrb.mxu2 %v4644_v47  ;;  %v5229_v21 = vld [vmem:[#allocation2 + $0x2c4] sm:$0xf]  ;;  %v4392_v61 = vor.u32 %v5293_v56, %v4389_v58  ;;  %v5266_v56 = vld [vmem:[#allocation2 + $0x3e4] sm:$0xf0] }
 0x144   :  { %2355 = vmatpush.bf16.msrb.mxu1 %v4324_v55  ;;  %v4136_v25 = vor.u32 %v5229_v21, %v4133_v20  ;;  %v5301_v47 = vld [vmem:[#allocation2 + $0x504] sm:$0xf] }
 0x145   :  { %2340 = vmatpush.bf16.msrb.mxu0 %v4100_v23  ;;  %v5317_v23 = vld [vmem:[#allocation2 + $0x584] sm:$0xf]  ;;  %v4424_v52 = vor.u32 %v5301_v47, %v4421_v49 }
 0x146   :  { %v4488_v26 = vor.u32 %v5317_v23, %v4485_v24  ;;  %v4037_v55 = vld [vmem:[#allocation2 + $0x220] sm:$0xf0]  ;;  %v308_v23 = vperm.slane %v6071_v11, 1 }
 0x147   :  { %2328 = vmatpush.bf16.msra.mxu3 %v3780_v28  ;;  %2368 = vmatpush.bf16.msrb.mxu2 %v4612_v59  ;;  %v4773_v28 = vld [vmem:[#allocation2 + $0x7e0] sm:$0xf0]  ;;  %v4040_v57 = vor.u32 %v5205_v54, %v4037_v55  ;;  %v4267_v55 = vld [vmem:[#allocation2 + $0x3c8] sm:$0xf] }
 0x148   :  { %2356 = vmatpush.bf16.msrb.mxu1 %v4292_v3  ;;  %v5365_v59 = vld [vmem:[#allocation2 + $0x704] sm:$0xf] }
 0x149   :  { %2341 = vmatpush.bf16.msrb.mxu0 %v4068_v30  ;;  %v5149_v30 = vld [vmem:[#allocation2 + $0x44] sm:$0xf] }
 0x14a   :  { %v4357_v0 = vld [vmem:[#allocation2 + $0x4a0] sm:$0xf0] }
 0x14b   :  { %2377 = vmatpush.bf16.msrb.mxu3 %v4008_v29  ;;  %2369 = vmatpush.bf16.msrb.mxu2 %v4580_v7  ;;  %v4776_v29 = vor.u32 %v5389_v27, %v4773_v28  ;;  %v5357_v1 = vld [vmem:[#allocation2 + $0x6c4] sm:$0xf] }
 0x14c   :  { %2405 = vmatpush.bf16.msra.mxu1 %v4520_v14  ;;  %v4645_v3 = vld [vmem:[#allocation2 + $0x6e0] sm:$0xf0] }
 0x14d   :  { %2342 = vmatpush.bf16.msrb.mxu0 %v4036_v33  ;;  %v3816_v33 = vor.u32 %v5149_v30, %v3813_v31  ;;  %v4648_v4 = vor.u32 %v5357_v1, %v4645_v3  ;;  %v5277_v6 = vld [vmem:[#allocation2 + $0x444] sm:$0xf]  ;;  %v5186_v1 = vld [vmem:[#allocation2 + $0x164] sm:$0xf0] }
 0x14e   :  { %v4325_v7 = vld [vmem:[#allocation2 + $0x460] sm:$0xf0]  ;;  %v5258_v3 = vld [vmem:[#allocation2 + $0x3a4] sm:$0xf0] }
 0x14f   :  { %2378 = vmatpush.bf16.msrb.mxu3 %v3976_v37  ;;  %2370 = vmatpush.bf16.msrb.mxu2 %v4548_v17  ;;  %v4104_v37 = vor.u32 %v5221_v32, %v4101_v34  ;;  %v4328_v9 = vor.u32 %v5277_v6, %v4325_v7  ;;  %v4613_v10 = vld [vmem:[#allocation2 + $0x6a0] sm:$0xf0] }
 0x150   :  { %2406 = vmatpush.bf16.msra.mxu1 %v4488_v26  ;;  %v5269_v16 = vld [vmem:[#allocation2 + $0x404] sm:$0xf] }
 0x151   :  { %2391 = vmatpush.bf16.msra.mxu0 %v4264_v39  ;;  %v5381_v39 = vld [vmem:[#allocation2 + $0x784] sm:$0xf] }
 0x152   :  { %v4744_v41 = vor.u32 %v5381_v39, %v4741_v40  ;;  %v4293_v17 = vld [vmem:[#allocation2 + $0x420] sm:$0xf0]  ;;  %v4011_v39 = vld [vmem:[#allocation2 + $0x1c8] sm:$0xf] }
 0x153   :  { %2379 = vmatpush.bf16.msrb.mxu3 %v3944_v48  ;;  %2419 = vmatpush.bf16.msra.mxu2 %v4776_v29  ;;  %v4072_v48 = vor.u32 %v5213_v45, %v4069_v46  ;;  %v5341_v18 = vld [vmem:[#allocation2 + $0x644] sm:$0xf]  ;;  %v4296_v19 = vor.u32 %v5269_v16, %v4293_v17  ;;  %v5202_v40 = vld [vmem:[#allocation2 + $0x1e4] sm:$0xf0] }
 0x154   :  { %2407 = vmatpush.bf16.msra.mxu1 %v4456_v38  ;;  %v4581_v21 = vld [vmem:[#allocation2 + $0x660] sm:$0xf0] }
 0x155   :  { %2392 = vmatpush.bf16.msra.mxu0 %v4232_v51  ;;  %v4709_v51 = vld [vmem:[#allocation2 + $0x760] sm:$0xf0] }
 0x156   :  { %v4712_v53 = vor.u32 %v5373_v50, %v4709_v51  ;;  %v4549_v26 = vld [vmem:[#allocation2 + $0x620] sm:$0xf0]  ;;  %v4012_v50 = vor.u32 %v5202_v40, %v4011_v39  ;;  %v3979_v51 = vld [vmem:[#allocation2 + $0x188] sm:$0xf] }
 0x157   :  { %2380 = vmatpush.bf16.msrb.mxu3 %v3912_v60  ;;  %2420 = vmatpush.bf16.msra.mxu2 %v4744_v41  ;;  %v4677_v60 = vld [vmem:[#allocation2 + $0x720] sm:$0xf0]  ;;  %v4139_v39 = vld [vmem:[#allocation2 + $0x2c8] sm:$0xf] }
 0x158   :  { %2408 = vmatpush.bf16.msra.mxu1 %v4424_v52  ;;  %v4680_v62 = vor.u32 %v5365_v59, %v4677_v60  ;;  %v5194_v52 = vld [vmem:[#allocation2 + $0x1a4] sm:$0xf0]  ;;  %v310_v60 = vperm.slane %v6071_v11, 3 }
 0x159   :  { %2393 = vmatpush.bf16.msra.mxu0 %v4200_v63  ;;  %v5285_v63 = vld [vmem:[#allocation2 + $0x484] sm:$0xf] }
 0x15a   :  { %v4360_v2 = vor.u32 %v5285_v63, %v4357_v0  ;;  %v3947_v63 = vld [vmem:[#allocation2 + $0x148] sm:$0xf] }
 0x15b   :  { %2381 = vmatpush.bf16.msrb.mxu3 %v3880_v8  ;;  %2421 = vmatpush.bf16.msra.mxu2 %v4712_v53  ;;  %v5349_v8 = vld [vmem:[#allocation2 + $0x684] sm:$0xf]  ;;  %v3948_v7 = vor.u32 %v5186_v1, %v3947_v63  ;;  %v5386_v63 = vld [vmem:[#allocation2 + $0x7a4] sm:$0xf0] }
 0x15c   :  { %2409 = vmatpush.bf16.msra.mxu1 %v4392_v61  ;;  %v3980_v61 = vor.u32 %v5194_v52, %v3979_v51  ;;  %v3819_v52 = vld [vmem:[#allocation2 + $0x48] sm:$0xf] }
 0x15d   :  { %2394 = vmatpush.bf16.msra.mxu0 %v4168_v12  ;;  %v4616_v12 = vor.u32 %v5349_v8, %v4613_v10 }
 0x15f   :  { %2382 = vmatpush.bf16.msrb.mxu3 %v3848_v22  ;;  %2422 = vmatpush.bf16.msra.mxu2 %v4680_v62  ;;  %v4584_v22 = vor.u32 %v5341_v18, %v4581_v21  ;;  %v4268_v62 = vor.u32 %v5266_v56, %v4267_v55 }
 0x160   :  { %2410 = vmatpush.bf16.msra.mxu1 %v4360_v2  ;;  %v4235_v2 = vld [vmem:[#allocation2 + $0x388] sm:$0xf] }
 0x161   :  { %2395 = vmatpush.bf16.msra.mxu0 %v4136_v25  ;;  %v5333_v25 = vld [vmem:[#allocation2 + $0x604] sm:$0xf]  ;;  %v4236_v8 = vor.u32 %v5258_v3, %v4235_v2  ;;  %v3787_v3 = vld [vmem:[#allocation2 + $0x8] sm:$0xf] }
 0x162   :  { %v4552_v28 = vor.u32 %v5333_v25, %v4549_v26  ;;  %v4171_v26 = vld [vmem:[#allocation2 + $0x308] sm:$0xf] }
 0x163   :  { %2383 = vmatpush.bf16.msrb.mxu3 %v3816_v33  ;;  %2423 = vmatpush.bf16.msra.mxu2 %v4648_v4 }
 0x164   :  { %2411 = vmatpush.bf16.msra.mxu1 %v4328_v9  ;;  %v3915_v9 = vld [vmem:[#allocation2 + $0x108] sm:$0xf] }
 0x165   :  { %2396 = vmatpush.bf16.msra.mxu0 %v4104_v37 }
 0x167   :  { %2384 = vmatpush.bf16.msrb.mxu3 %v3784_v44  ;;  %2424 = vmatpush.bf16.msra.mxu2 %v4616_v12  ;;  %v5178_v12 = vld [vmem:[#allocation2 + $0x124] sm:$0xf0] }
 0x168   :  { %2412 = vmatpush.bf16.msra.mxu1 %v4296_v19  ;;  %v3916_v21 = vor.u32 %v5178_v12, %v3915_v9  ;;  %v4427_v9 = vld [vmem:[#allocation2 + $0x508] sm:$0xf] }
 0x169   :  { %2397 = vmatpush.bf16.msra.mxu0 %v4072_v48  ;;  %v5378_v12 = vld [vmem:[#allocation2 + $0x764] sm:$0xf0] }
 0x16b   :  { %2425 = vmatpush.bf16.msra.mxu2 %v4584_v22 }
 0x16d   :  { %2398 = vmatpush.bf16.msra.mxu0 %v4040_v57 }
 0x16f   :  { %2426 = vmatpush.bf16.msra.mxu2 %v4552_v28 }
 0x1a7   :  { %v672_v5 = vpop.f32.mrf.mxu1 }
 0x1a8   :  { %v673_v32 = vadd.f32 %v672_v5, %v308_v23 }
 0x1ad   :  { %v644_v14 = vpop.f32.mrf.mxu3  ;;  %v658_v15 = vpop.f32.mrf.mxu0 }
 0x1ae   :  { %v645_v20 = vadd.f32 %v644_v14, %v307_v13  ;;  %v5250_v14 = vld [vmem:[#allocation2 + $0x364] sm:$0xf0] }
 0x1af   :  { %v674_v24 = vpop.f32.mrf.mxu1 }
 0x1b0   :  { %v659_v29 = vadd.f32 %v658_v15, %v645_v20  ;;  %v675_v37 = vadd.f32 %v674_v24, %v308_v23  ;;  %v3883_v20 = vld [vmem:[#allocation2 + $0xc8] sm:$0xf] }
 0x1b1   :  { %v5170_v23 = vld [vmem:[#allocation2 + $0xe4] sm:$0xf0] }
 0x1b2   :  { %v747_v34 = vmul.f32 0.2, %v659_v29 }
 0x1b3   :  { %v686_v27 = vpop.f32.mrf.mxu2 }
 0x1b4   :  { %v687_v35 = vadd.f32 %v686_v27, %v673_v32  ;;  %v755_v43 = vmax.f32 %v659_v29, %v747_v34  ;;  %v5242_v27 = vld [vmem:[#allocation2 + $0x324] sm:$0xf0] }
 0x1b5   :  { %v646_v30 = vpop.f32.mrf.mxu3  ;;  %v660_v31 = vpop.f32.mrf.mxu0  ;;  %v4523_v29 = vld [vmem:[#allocation2 + $0x5c8] sm:$0xf] }
 0x1b6   :  { %v647_v33 = vadd.f32 %v646_v30, %v307_v13  ;;  %v748_v44 = vmul.f32 0.2, %v687_v35  ;;  %v4203_v13 = vld [vmem:[#allocation2 + $0x348] sm:$0xf] }
 0x1b7   :  { %v728_v46 = vpop.f32.mrf.mxu1  ;;  %v4204_v22 = vor.u32 %v5250_v14, %v4203_v13  ;;  %v5330_v30 = vld [vmem:[#allocation2 + $0x5e4] sm:$0xf0]  ;;  %v5198_v13 = vld [vmem:[#allocation2 + $0x1cc] sm:$0xf] }
 0x1b8   :  { %v661_v36 = vadd.f32 %v660_v31, %v647_v33  ;;  %v756_v57 = vmax.f32 %v687_v35, %v748_v44  ;;  %v729_v10 = vadd.f32 %v728_v46, %v310_v60  ;;  %v3884_v35 = vor.u32 %v5170_v23, %v3883_v20  ;;  %v4491_v44 = vld [vmem:[#allocation2 + $0x588] sm:$0xf]  ;;  %v4013_v14 = vld [vmem:[#allocation2 + $0x1e8] sm:$0xf0] }
 0x1b9   :  { %v4779_v46 = vld [vmem:[#allocation2 + $0x7c8] sm:$0xf]  ;;  %v4016_v23 = vor.u32 %v5198_v13, %v4013_v14 }
 0x1ba   :  { %v751_v38 = vmul.f32 0.2, %v661_v36  ;;  %v5298_v20 = vld [vmem:[#allocation2 + $0x4e4] sm:$0xf0] }
 0x1bb   :  { %v688_v41 = vpop.f32.mrf.mxu2  ;;  %v5338_v14 = vld [vmem:[#allocation2 + $0x624] sm:$0xf0] }
 0x1bc   :  { %v759_v45 = vmax.f32 %v661_v36, %v751_v38  ;;  %v689_v47 = vadd.f32 %v688_v41, %v675_v37  ;;  %v4172_v36 = vor.u32 %v5242_v27, %v4171_v26  ;;  %v3851_v37 = vld [vmem:[#allocation2 + $0x88] sm:$0xf]  ;;  %v5190_v26 = vld [vmem:[#allocation2 + $0x18c] sm:$0xf] }
 0x1bd   :  { %v700_v48 = vpop.f32.mrf.mxu3  ;;  %v714_v49 = vpop.f32.mrf.mxu0  ;;  %v5162_v38 = vld [vmem:[#allocation2 + $0xa4] sm:$0xf0]  ;;  %v3981_v27 = vld [vmem:[#allocation2 + $0x1a8] sm:$0xf0] }
 0x1be   :  { %v6076_v53 = vpack.c.bf16 %v759_v45, %v755_v43  ;;  %v752_v54 = vmul.f32 0.2, %v689_v47  ;;  %v701_v59 = vadd.f32 %v700_v48, %v309_v42  ;;  %v5234_v43 = vld [vmem:[#allocation2 + $0x2e4] sm:$0xf0] }
 0x1bf   :  { %v730_v15 = vpop.f32.mrf.mxu1  ;;  %v5322_v45 = vld [vmem:[#allocation2 + $0x5a4] sm:$0xf0]  ;;  %v4140_v51 = vor.u32 %v5234_v43, %v4139_v39  ;;  %v5182_v39 = vld [vmem:[#allocation2 + $0x14c] sm:$0xf] }
 0x1c0   :  { %v760_v58 = vmax.f32 %v689_v47, %v752_v54  ;;  %2329 = vmatmul.bf16.vlgmr.msra.gmra.mxu3 %v6076_v53  ;;  %v715_v5 = vadd.f32 %v714_v49, %v701_v59  ;;  %v731_v24 = vadd.f32 %v730_v15, %v310_v60  ;;  %v5394_v47 = vld [vmem:[#allocation2 + $0x7e4] sm:$0xf0]  ;;  %v4492_v56 = vor.u32 %v5322_v45, %v4491_v44  ;;  %v4237_v43 = vld [vmem:[#allocation2 + $0x3a8] sm:$0xf0] }
 0x1c1   :  { %2433 = vmatpush.bf16.msra.mxu3 %v4012_v50  ;;  %v3852_v50 = vor.u32 %v5162_v38, %v3851_v37  ;;  %v5154_v54 = vld [vmem:[#allocation2 + $0x64] sm:$0xf0] }
 0x1c2   :  { %v6080_v0 = vpack.c.bf16 %v760_v58, %v756_v57  ;;  %v749_v17 = vmul.f32 0.2, %v715_v5  ;;  %v4780_v57 = vor.u32 %v5394_v47, %v4779_v46  ;;  %v4107_v58 = vld [vmem:[#allocation2 + $0x288] sm:$0xf]  ;;  %v3820_v1 = vor.u32 %v5154_v54, %v3819_v52  ;;  %v5174_v52 = vld [vmem:[#allocation2 + $0x10c] sm:$0xf] }
 0x1c3   :  { %v742_v4 = vpop.f32.mrf.mxu2  ;;  %v5226_v59 = vld [vmem:[#allocation2 + $0x2a4] sm:$0xf0]  ;;  %v3917_v54 = vld [vmem:[#allocation2 + $0x128] sm:$0xf0] }
 0x1c4   :  { %2343 = vmatmul.bf16.vlgmr.msrb.gmra.mxu0 %v6080_v0  ;;  %v743_v18 = vadd.f32 %v742_v4, %v729_v10  ;;  %v757_v31 = vmax.f32 %v715_v5, %v749_v17  ;;  %v4459_v60 = vld [vmem:[#allocation2 + $0x548] sm:$0xf]  ;;  %v4108_v2 = vor.u32 %v5226_v59, %v4107_v58 }
 0x1c5   :  { %2434 = vmatpush.bf16.msra.mxu3 %v3980_v61  ;;  %2447 = vmatpush.bf16.msrb.mxu0 %v4268_v62  ;;  %v702_v6 = vpop.f32.mrf.mxu3  ;;  %v716_v16 = vpop.f32.mrf.mxu0  ;;  %v5314_v61 = vld [vmem:[#allocation2 + $0x564] sm:$0xf0] }
 0x1c6   :  { %v703_v11 = vadd.f32 %v702_v6, %v309_v42  ;;  %v750_v32 = vmul.f32 0.2, %v743_v18  ;;  %v4524_v42 = vor.u32 %v5330_v30, %v4523_v29  ;;  %v4747_v62 = vld [vmem:[#allocation2 + $0x788] sm:$0xf]  ;;  %v4460_v5 = vor.u32 %v5314_v61, %v4459_v60  ;;  %v4269_v29 = vld [vmem:[#allocation2 + $0x3e8] sm:$0xf0] }
 0x1c7   :  { %v5146_v4 = vld [vmem:[#allocation2 + $0x24] sm:$0xf0]  ;;  %v4748_v6 = vor.u32 %v5386_v63, %v4747_v62  ;;  %v3920_v62 = vor.u32 %v5174_v52, %v3917_v54 }
 0x1c8   :  { %v717_v19 = vadd.f32 %v716_v16, %v703_v11  ;;  %v758_v48 = vmax.f32 %v743_v18, %v750_v32  ;;  %v5306_v10 = vld [vmem:[#allocation2 + $0x524] sm:$0xf0]  ;;  %v3788_v15 = vor.u32 %v5146_v4, %v3787_v3  ;;  %v5166_v3 = vld [vmem:[#allocation2 + $0xcc] sm:$0xf] }
 0x1c9   :  { %2435 = vmatpush.bf16.msra.mxu3 %v3948_v7  ;;  %2448 = vmatpush.bf16.msrb.mxu0 %v4236_v8  ;;  %v4075_v7 = vld [vmem:[#allocation2 + $0x248] sm:$0xf]  ;;  %v4428_v18 = vor.u32 %v5306_v10, %v4427_v9  ;;  %v3885_v4 = vld [vmem:[#allocation2 + $0xe8] sm:$0xf0] }
 0x1ca   :  { %v753_v25 = vmul.f32 0.2, %v717_v19  ;;  %v5218_v8 = vld [vmem:[#allocation2 + $0x264] sm:$0xf0] }
 0x1cb   :  { %v744_v28 = vpop.f32.mrf.mxu2  ;;  %v4715_v11 = vld [vmem:[#allocation2 + $0x748] sm:$0xf]  ;;  %v4076_v16 = vor.u32 %v5218_v8, %v4075_v7  ;;  %v5326_v7 = vld [vmem:[#allocation2 + $0x5cc] sm:$0xf] }
 0x1cc   :  { %v761_v33 = vmax.f32 %v717_v19, %v753_v25  ;;  %v745_v34 = vadd.f32 %v744_v28, %v731_v24  ;;  %v4043_v17 = vld [vmem:[#allocation2 + $0x208] sm:$0xf]  ;;  %v4716_v19 = vor.u32 %v5378_v12, %v4715_v11  ;;  %v5262_v28 = vld [vmem:[#allocation2 + $0x3cc] sm:$0xf]  ;;  %v3888_v12 = vor.u32 %v5166_v3, %v3885_v4  ;;  %v5195_v3 = vld [vmem:[#allocation2 + $0x1ac] sm:$0xf0] }
 0x1cd   :  { %2436 = vmatpush.bf16.msra.mxu3 %v3916_v21  ;;  %2449 = vmatpush.bf16.msrb.mxu0 %v4204_v22  ;;  %v5210_v21 = vld [vmem:[#allocation2 + $0x224] sm:$0xf0]  ;;  %v4525_v8 = vld [vmem:[#allocation2 + $0x5e8] sm:$0xf0]  ;;  %v4275_v4 = vld [vmem:[#allocation2 + $0x3d0] sm:$0xf] }
 0x1ce   :  { %v6083_v40 = vpack.c.bf16 %v761_v33, %v757_v31  ;;  %v754_v41 = vmul.f32 0.2, %v745_v34  ;;  %v4395_v22 = vld [vmem:[#allocation2 + $0x4c8] sm:$0xf]  ;;  %v4044_v30 = vor.u32 %v5210_v21, %v4043_v17  ;;  %v4528_v17 = vor.u32 %v5326_v7, %v4525_v8  ;;  %v5318_v21 = vld [vmem:[#allocation2 + $0x58c] sm:$0xf] }
 0x1cf   :  { %v4683_v24 = vld [vmem:[#allocation2 + $0x708] sm:$0xf]  ;;  %v4396_v31 = vor.u32 %v5298_v20, %v4395_v22  ;;  %v4493_v22 = vld [vmem:[#allocation2 + $0x5a8] sm:$0xf0] }
 0x1d0   :  { %v762_v49 = vmax.f32 %v745_v34, %v754_v41  ;;  %2357 = vmatmul.bf16.vlgmr.msrb.gmra.mxu1 %v6083_v40  ;;  %2385 = vmatmul.bf16.vlgmr.msrb.gmra.mxu3 %v6076_v53  ;;  %v5370_v25 = vld [vmem:[#allocation2 + $0x724] sm:$0xf0]  ;;  %v3949_v41 = vld [vmem:[#allocation2 + $0x168] sm:$0xf0] }
 0x1d1   :  { %2437 = vmatpush.bf16.msra.mxu3 %v3884_v35  ;;  %2450 = vmatpush.bf16.msrb.mxu0 %v4172_v36  ;;  %v4684_v32 = vor.u32 %v5370_v25, %v4683_v24  ;;  %v4363_v33 = vld [vmem:[#allocation2 + $0x488] sm:$0xf]  ;;  %v3984_v35 = vor.u32 %v5190_v26, %v3981_v27  ;;  %v4272_v36 = vor.u32 %v5262_v28, %v4269_v29  ;;  %v5390_v20 = vld [vmem:[#allocation2 + $0x7cc] sm:$0xf] }
 0x1d2   :  { %v6087_v55 = vpack.c.bf16 %v762_v49, %v758_v48  ;;  %2461 = vmatpush.bf16.msrb.mxu1 %v4524_v42  ;;  %v5290_v34 = vld [vmem:[#allocation2 + $0x4a4] sm:$0xf0]  ;;  %v5254_v42 = vld [vmem:[#allocation2 + $0x38c] sm:$0xf]  ;;  %v3952_v48 = vor.u32 %v5182_v39, %v3949_v41  ;;  %v4496_v29 = vor.u32 %v5318_v21, %v4493_v22 }
 0x1d3   :  { %v4651_v37 = vld [vmem:[#allocation2 + $0x6c8] sm:$0xf]  ;;  %v4364_v44 = vor.u32 %v5290_v34, %v4363_v33  ;;  %v4240_v49 = vor.u32 %v5254_v42, %v4237_v43  ;;  %v5150_v27 = vld [vmem:[#allocation2 + $0x4c] sm:$0xf] }
 0x1d4   :  { %2371 = vmatmul.bf16.vlgmr.msrb.gmra.mxu2 %v6087_v55  ;;  %2399 = vmatmul.bf16.vlgmr.msra.gmra.mxu0 %v6080_v0  ;;  %v5362_v38 = vld [vmem:[#allocation2 + $0x6e4] sm:$0xf0]  ;;  %v3821_v28 = vld [vmem:[#allocation2 + $0x68] sm:$0xf0] }
 0x1d5   :  { %2438 = vmatpush.bf16.msra.mxu3 %v3852_v50  ;;  %2451 = vmatpush.bf16.msrb.mxu0 %v4140_v51  ;;  %v4652_v45 = vor.u32 %v5362_v38, %v4651_v37  ;;  %v4331_v46 = vld [vmem:[#allocation2 + $0x448] sm:$0xf]  ;;  %v5310_v33 = vld [vmem:[#allocation2 + $0x54c] sm:$0xf]  ;;  %v3824_v37 = vor.u32 %v5150_v27, %v3821_v28  ;;  %v3923_v27 = vld [vmem:[#allocation2 + $0x110] sm:$0xf] }
 0x1d6   :  { %2462 = vmatpush.bf16.msrb.mxu1 %v4492_v56  ;;  %2475 = vmatpush.bf16.msrb.mxu2 %v4780_v57  ;;  %v5282_v47 = vld [vmem:[#allocation2 + $0x464] sm:$0xf0]  ;;  %v5246_v56 = vld [vmem:[#allocation2 + $0x34c] sm:$0xf]  ;;  %v5179_v28 = vld [vmem:[#allocation2 + $0x12c] sm:$0xf0] }
 0x1d7   :  { %v4619_v50 = vld [vmem:[#allocation2 + $0x688] sm:$0xf]  ;;  %v4205_v57 = vld [vmem:[#allocation2 + $0x368] sm:$0xf0]  ;;  %v4332_v58 = vor.u32 %v5282_v47, %v4331_v46 }
 0x1d8   :  { %v5354_v51 = vld [vmem:[#allocation2 + $0x6a4] sm:$0xf0]  ;;  %v4208_v63 = vor.u32 %v5246_v56, %v4205_v57  ;;  %v4461_v34 = vld [vmem:[#allocation2 + $0x568] sm:$0xf0] }
 0x1d9   :  { %2439 = vmatpush.bf16.msra.mxu3 %v3820_v1  ;;  %2452 = vmatpush.bf16.msrb.mxu0 %v4108_v2  ;;  %v4620_v59 = vor.u32 %v5354_v51, %v4619_v50  ;;  %v4299_v60 = vld [vmem:[#allocation2 + $0x408] sm:$0xf]  ;;  %v5142_v39 = vld [vmem:[#allocation2 + $0xc] sm:$0xf]  ;;  %v4464_v42 = vor.u32 %v5310_v33, %v4461_v34  ;;  %v4019_v50 = vld [vmem:[#allocation2 + $0x1d0] sm:$0xf] }
 0x1da   :  { %2463 = vmatpush.bf16.msrb.mxu1 %v4460_v5  ;;  %2476 = vmatpush.bf16.msrb.mxu2 %v4748_v6  ;;  %v5274_v61 = vld [vmem:[#allocation2 + $0x424] sm:$0xf0]  ;;  %v5238_v5 = vld [vmem:[#allocation2 + $0x30c] sm:$0xf]  ;;  %v5203_v51 = vld [vmem:[#allocation2 + $0x1ec] sm:$0xf0] }
 0x1db   :  { %v4587_v1 = vld [vmem:[#allocation2 + $0x648] sm:$0xf]  ;;  %v4173_v6 = vld [vmem:[#allocation2 + $0x328] sm:$0xf0]  ;;  %v4300_v9 = vor.u32 %v5274_v61, %v4299_v60 }
 0x1dc   :  { %v5346_v2 = vld [vmem:[#allocation2 + $0x664] sm:$0xf0]  ;;  %v4176_v13 = vor.u32 %v5238_v5, %v4173_v6  ;;  %v3789_v41 = vld [vmem:[#allocation2 + $0x28] sm:$0xf0]  ;;  %v5267_v5 = vld [vmem:[#allocation2 + $0x3ec] sm:$0xf0] }
 0x1dd   :  { %2440 = vmatpush.bf16.msra.mxu3 %v3788_v15  ;;  %2453 = vmatpush.bf16.msrb.mxu0 %v4076_v16  ;;  %v4588_v10 = vor.u32 %v5346_v2, %v4587_v1  ;;  %v4555_v11 = vld [vmem:[#allocation2 + $0x608] sm:$0xf]  ;;  %v5158_v15 = vld [vmem:[#allocation2 + $0x8c] sm:$0xf]  ;;  %v3792_v52 = vor.u32 %v5142_v39, %v3789_v41  ;;  %v3987_v2 = vld [vmem:[#allocation2 + $0x190] sm:$0xf] }
 0x1de   :  { %2464 = vmatpush.bf16.msrb.mxu1 %v4428_v18  ;;  %2477 = vmatpush.bf16.msrb.mxu2 %v4716_v19  ;;  %v3853_v16 = vld [vmem:[#allocation2 + $0xa8] sm:$0xf0]  ;;  %v4556_v24 = vor.u32 %v5338_v14, %v4555_v11  ;;  %v3988_v11 = vor.u32 %v5195_v3, %v3987_v2  ;;  %v3891_v39 = vld [vmem:[#allocation2 + $0xd0] sm:$0xf] }
 0x1df   :  { %v5230_v18 = vld [vmem:[#allocation2 + $0x2cc] sm:$0xf]  ;;  %v3856_v25 = vor.u32 %v5158_v15, %v3853_v16  ;;  %v3955_v15 = vld [vmem:[#allocation2 + $0x150] sm:$0xf] }
 0x1e0   :  { %2413 = vmatmul.bf16.vlgmr.msra.gmra.mxu1 %v6083_v40  ;;  %2441 = vmatmul.bf16.vlgmr.msra.gmra.mxu3 %v6076_v53  ;;  %v4141_v19 = vld [vmem:[#allocation2 + $0x2e8] sm:$0xf0]  ;;  %v5187_v16 = vld [vmem:[#allocation2 + $0x16c] sm:$0xf0] }
 0x1e1   :  { %2489 = vmatpush.bf16.msrb.mxu3 %v4016_v23  ;;  %2454 = vmatpush.bf16.msrb.mxu0 %v4044_v30  ;;  %v4781_v23 = vld [vmem:[#allocation2 + $0x7e8] sm:$0xf0]  ;;  %v4144_v26 = vor.u32 %v5230_v18, %v4141_v19  ;;  %v5259_v18 = vld [vmem:[#allocation2 + $0x3ac] sm:$0xf0] }
 0x1e2   :  { %2465 = vmatpush.bf16.msrb.mxu1 %v4396_v31  ;;  %2478 = vmatpush.bf16.msrb.mxu2 %v4684_v32  ;;  %v4784_v30 = vor.u32 %v5390_v20, %v4781_v23  ;;  %v5222_v31 = vld [vmem:[#allocation2 + $0x28c] sm:$0xf]  ;;  %v3956_v23 = vor.u32 %v5187_v16, %v3955_v15  ;;  %v5171_v41 = vld [vmem:[#allocation2 + $0xec] sm:$0xf0] }
 0x1e3   :  { %v4109_v32 = vld [vmem:[#allocation2 + $0x2a8] sm:$0xf0]  ;;  %v3827_v3 = vld [vmem:[#allocation2 + $0x50] sm:$0xf] }
 0x1e4   :  { %2427 = vmatmul.bf16.vlgmr.msra.gmra.mxu2 %v6087_v55  ;;  %2455 = vmatmul.bf16.vlgmr.msrb.gmra.mxu0 %v6080_v0  ;;  %v4112_v38 = vor.u32 %v5222_v31, %v4109_v32  ;;  %v5302_v46 = vld [vmem:[#allocation2 + $0x50c] sm:$0xf]  ;;  %v3795_v15 = vld [vmem:[#allocation2 + $0x10] sm:$0xf] }
 0x1e5   :  { %2490 = vmatpush.bf16.msrb.mxu3 %v3984_v35  ;;  %2503 = vmatpush.bf16.msra.mxu0 %v4272_v36  ;;  %v5382_v35 = vld [vmem:[#allocation2 + $0x78c] sm:$0xf]  ;;  %v5147_v16 = vld [vmem:[#allocation2 + $0x2c] sm:$0xf0] }
 0x1e6   :  { %2466 = vmatpush.bf16.msrb.mxu1 %v4364_v44  ;;  %2479 = vmatpush.bf16.msrb.mxu2 %v4652_v45  ;;  %v4749_v36 = vld [vmem:[#allocation2 + $0x7a8] sm:$0xf0] }
 0x1e7   :  { %v4752_v43 = vor.u32 %v5382_v35, %v4749_v36  ;;  %v5214_v44 = vld [vmem:[#allocation2 + $0x24c] sm:$0xf]  ;;  %v3924_v35 = vor.u32 %v5179_v28, %v3923_v27  ;;  %v3796_v27 = vor.u32 %v5147_v16, %v3795_v15  ;;  %v5167_v15 = vld [vmem:[#allocation2 + $0xd4] sm:$0xf] }
 0x1e8   :  { %v4077_v45 = vld [vmem:[#allocation2 + $0x268] sm:$0xf0]  ;;  %v3893_v16 = vld [vmem:[#allocation2 + $0xf0] sm:$0xf0] }
 0x1e9   :  { %2491 = vmatpush.bf16.msrb.mxu3 %v3952_v48  ;;  %2504 = vmatpush.bf16.msra.mxu0 %v4240_v49  ;;  %v4429_v47 = vld [vmem:[#allocation2 + $0x528] sm:$0xf0]  ;;  %v4080_v54 = vor.u32 %v5214_v44, %v4077_v45  ;;  %v4531_v44 = vld [vmem:[#allocation2 + $0x5d0] sm:$0xf] }
 0x1ea   :  { %2467 = vmatpush.bf16.msrb.mxu1 %v4332_v58  ;;  %2480 = vmatpush.bf16.msrb.mxu2 %v4620_v59  ;;  %v5374_v48 = vld [vmem:[#allocation2 + $0x74c] sm:$0xf]  ;;  %v4432_v57 = vor.u32 %v5302_v46, %v4429_v47  ;;  %v5331_v45 = vld [vmem:[#allocation2 + $0x5ec] sm:$0xf0] }
 0x1eb   :  { %v4717_v49 = vld [vmem:[#allocation2 + $0x768] sm:$0xf0] }
 0x1ec   :  { %v5206_v56 = vld [vmem:[#allocation2 + $0x20c] sm:$0xf]  ;;  %v4720_v58 = vor.u32 %v5374_v48, %v4717_v49  ;;  %v3892_v49 = vor.u32 %v5171_v41, %v3891_v39  ;;  %v3989_v39 = vld [vmem:[#allocation2 + $0x1b0] sm:$0xf0] }
 0x1ed   :  { %2492 = vmatpush.bf16.msrb.mxu3 %v3920_v62  ;;  %2505 = vmatpush.bf16.msra.mxu0 %v4208_v63  ;;  %v4045_v59 = vld [vmem:[#allocation2 + $0x228] sm:$0xf0]  ;;  %v4020_v62 = vor.u32 %v5203_v51, %v4019_v50  ;;  %v5263_v41 = vld [vmem:[#allocation2 + $0x3d4] sm:$0xf] }
 0x1ee   :  { %2468 = vmatpush.bf16.msrb.mxu1 %v4300_v9  ;;  %2481 = vmatpush.bf16.msrb.mxu2 %v4588_v10  ;;  %v5294_v60 = vld [vmem:[#allocation2 + $0x4cc] sm:$0xf]  ;;  %v4048_v6 = vor.u32 %v5206_v56, %v4045_v59  ;;  %v4532_v56 = vor.u32 %v5331_v45, %v4531_v44  ;;  %v4499_v59 = vld [vmem:[#allocation2 + $0x590] sm:$0xf] }
 0x1ef   :  { %v4397_v61 = vld [vmem:[#allocation2 + $0x4e8] sm:$0xf0] }
 0x1f0   :  { %v5366_v63 = vld [vmem:[#allocation2 + $0x70c] sm:$0xf]  ;;  %v4400_v7 = vor.u32 %v5294_v60, %v4397_v61  ;;  %v5323_v60 = vld [vmem:[#allocation2 + $0x5ac] sm:$0xf0] }
 0x1f1   :  { %2493 = vmatpush.bf16.msrb.mxu3 %v3888_v12  ;;  %2506 = vmatpush.bf16.msra.mxu0 %v4176_v13  ;;  %v4685_v1 = vld [vmem:[#allocation2 + $0x728] sm:$0xf0]  ;;  %v4276_v12 = vor.u32 %v5267_v5, %v4275_v4  ;;  %v4787_v61 = vld [vmem:[#allocation2 + $0x7d0] sm:$0xf]  ;;  %v4500_v5 = vor.u32 %v5323_v60, %v4499_v59 }
 0x1f2   :  { %2517 = vmatpush.bf16.msra.mxu1 %v4528_v17  ;;  %2482 = vmatpush.bf16.msrb.mxu2 %v4556_v24  ;;  %v4688_v8 = vor.u32 %v5366_v63, %v4685_v1  ;;  %v5286_v9 = vld [vmem:[#allocation2 + $0x48c] sm:$0xf]  ;;  %v4243_v17 = vld [vmem:[#allocation2 + $0x390] sm:$0xf] }
 0x1f3   :  { %2469 = vmatmul.bf16.vlgmr.msrb.gmra.mxu1 %v6083_v40  ;;  %v4365_v10 = vld [vmem:[#allocation2 + $0x4a8] sm:$0xf0]  ;;  %v4244_v24 = vor.u32 %v5259_v18, %v4243_v17  ;;  %v5155_v4 = vld [vmem:[#allocation2 + $0x6c] sm:$0xf0] }
 0x1f4   :  { %v5358_v13 = vld [vmem:[#allocation2 + $0x6cc] sm:$0xf]  ;;  %v4368_v19 = vor.u32 %v5286_v9, %v4365_v10  ;;  %v4467_v9 = vld [vmem:[#allocation2 + $0x550] sm:$0xf] }
 0x1f5   :  { %2494 = vmatpush.bf16.msrb.mxu3 %v3856_v25  ;;  %2507 = vmatpush.bf16.msra.mxu0 %v4144_v26  ;;  %v4653_v14 = vld [vmem:[#allocation2 + $0x6e8] sm:$0xf0]  ;;  %v5315_v10 = vld [vmem:[#allocation2 + $0x56c] sm:$0xf0] }
 0x1f6   :  { %2518 = vmatpush.bf16.msra.mxu1 %v4496_v29  ;;  %2531 = vmatpush.bf16.msra.mxu2 %v4784_v30  ;;  %v4656_v21 = vor.u32 %v5358_v13, %v4653_v14  ;;  %v5278_v22 = vld [vmem:[#allocation2 + $0x44c] sm:$0xf]  ;;  %v4211_v29 = vld [vmem:[#allocation2 + $0x350] sm:$0xf]  ;;  %v3828_v13 = vor.u32 %v5155_v4, %v3827_v3  ;;  %v4468_v17 = vor.u32 %v5315_v10, %v4467_v9  ;;  %v5175_v3 = vld [vmem:[#allocation2 + $0x114] sm:$0xf] }
 0x1f7   :  { %2483 = vmatmul.bf16.vlgmr.msrb.gmra.mxu2 %v6087_v55  ;;  %v4333_v20 = vld [vmem:[#allocation2 + $0x468] sm:$0xf0]  ;;  %v5251_v30 = vld [vmem:[#allocation2 + $0x36c] sm:$0xf0]  ;;  %v3925_v4 = vld [vmem:[#allocation2 + $0x130] sm:$0xf0] }
 0x1f8   :  { %v5350_v25 = vld [vmem:[#allocation2 + $0x68c] sm:$0xf]  ;;  %v4336_v31 = vor.u32 %v5278_v22, %v4333_v20  ;;  %v4212_v36 = vor.u32 %v5251_v30, %v4211_v29  ;;  %v4435_v22 = vld [vmem:[#allocation2 + $0x510] sm:$0xf] }
 0x1f9   :  { %2495 = vmatpush.bf16.msrb.mxu3 %v3824_v37  ;;  %2508 = vmatpush.bf16.msra.mxu0 %v4112_v38  ;;  %v4621_v26 = vld [vmem:[#allocation2 + $0x6a8] sm:$0xf0]  ;;  %v5307_v20 = vld [vmem:[#allocation2 + $0x52c] sm:$0xf0] }
 0x1fa   :  { %2519 = vmatpush.bf16.msra.mxu1 %v4464_v42  ;;  %2532 = vmatpush.bf16.msra.mxu2 %v4752_v43  ;;  %v4624_v32 = vor.u32 %v5350_v25, %v4621_v26  ;;  %v5270_v33 = vld [vmem:[#allocation2 + $0x40c] sm:$0xf]  ;;  %v4179_v42 = vld [vmem:[#allocation2 + $0x310] sm:$0xf]  ;;  %v5199_v25 = vld [vmem:[#allocation2 + $0x1d4] sm:$0xf]  ;;  %v4436_v30 = vor.u32 %v5307_v20, %v4435_v22 }
 0x1fb   :  { %v4301_v34 = vld [vmem:[#allocation2 + $0x428] sm:$0xf0]  ;;  %v5243_v43 = vld [vmem:[#allocation2 + $0x32c] sm:$0xf0]  ;;  %v4021_v26 = vld [vmem:[#allocation2 + $0x1f0] sm:$0xf0] }
 0x1fc   :  { %v5342_v37 = vld [vmem:[#allocation2 + $0x64c] sm:$0xf]  ;;  %v4304_v46 = vor.u32 %v5270_v33, %v4301_v34  ;;  %v4180_v50 = vor.u32 %v5243_v43, %v4179_v42  ;;  %v4051_v29 = vld [vmem:[#allocation2 + $0x210] sm:$0xf]  ;;  %v4277_v42 = vld [vmem:[#allocation2 + $0x3f0] sm:$0xf0] }
 0x1fd   :  { %2496 = vmatpush.bf16.msrb.mxu3 %v3792_v52  ;;  %2509 = vmatpush.bf16.msra.mxu0 %v4080_v54  ;;  %v4589_v38 = vld [vmem:[#allocation2 + $0x668] sm:$0xf0]  ;;  %v3859_v52 = vld [vmem:[#allocation2 + $0x90] sm:$0xf] }
 0x1fe   :  { %2520 = vmatpush.bf16.msra.mxu1 %v4432_v57  ;;  %2533 = vmatpush.bf16.msra.mxu2 %v4720_v58  ;;  %v4592_v47 = vor.u32 %v5342_v37, %v4589_v38  ;;  %v5334_v48 = vld [vmem:[#allocation2 + $0x60c] sm:$0xf]  ;;  %v5163_v54 = vld [vmem:[#allocation2 + $0xac] sm:$0xf0]  ;;  %v5191_v38 = vld [vmem:[#allocation2 + $0x194] sm:$0xf] }
 0x1ff   :  { %v4557_v51 = vld [vmem:[#allocation2 + $0x628] sm:$0xf0]  ;;  %v4147_v57 = vld [vmem:[#allocation2 + $0x2d0] sm:$0xf]  ;;  %v3860_v1 = vor.u32 %v5163_v54, %v3859_v52  ;;  %v5183_v52 = vld [vmem:[#allocation2 + $0x154] sm:$0xf] }
 0x200   :  { %2497 = vmatmul.bf16.vlgmr.msrb.gmra.mxu3 %v6076_v53  ;;  %v5235_v58 = vld [vmem:[#allocation2 + $0x2ec] sm:$0xf0]  ;;  %v4560_v63 = vor.u32 %v5334_v48, %v4557_v51  ;;  %v3992_v48 = vor.u32 %v5191_v38, %v3989_v39  ;;  %v3957_v54 = vld [vmem:[#allocation2 + $0x170] sm:$0xf0] }
 0x201   :  { %2545 = vmatpush.bf16.msra.mxu3 %v4020_v62  ;;  %2510 = vmatpush.bf16.msra.mxu0 %v4048_v6  ;;  %v5395_v62 = vld [vmem:[#allocation2 + $0x7ec] sm:$0xf0]  ;;  %v4148_v2 = vor.u32 %v5235_v58, %v4147_v57  ;;  %v4245_v57 = vld [vmem:[#allocation2 + $0x3b0] sm:$0xf0] }
 0x202   :  { %2521 = vmatpush.bf16.msra.mxu1 %v4400_v7  ;;  %2534 = vmatpush.bf16.msra.mxu2 %v4688_v8  ;;  %v4788_v6 = vor.u32 %v5395_v62, %v4787_v61  ;;  %v4115_v7 = vld [vmem:[#allocation2 + $0x290] sm:$0xf]  ;;  %v3960_v62 = vor.u32 %v5183_v52, %v3957_v54  ;;  %v5151_v39 = vld [vmem:[#allocation2 + $0x54] sm:$0xf] }
 0x203   :  { %v5227_v8 = vld [vmem:[#allocation2 + $0x2ac] sm:$0xf0]  ;;  %v5143_v52 = vld [vmem:[#allocation2 + $0x14] sm:$0xf] }
 0x204   :  { %2511 = vmatmul.bf16.vlgmr.msra.gmra.mxu0 %v6080_v0  ;;  %v4116_v14 = vor.u32 %v5227_v8, %v4115_v7  ;;  %v4403_v33 = vld [vmem:[#allocation2 + $0x4d0] sm:$0xf]  ;;  %v3797_v54 = vld [vmem:[#allocation2 + $0x30] sm:$0xf0] }
 0x205   :  { %2546 = vmatpush.bf16.msra.mxu3 %v3988_v11  ;;  %2559 = vmatpush.bf16.msrb.mxu0 %v4276_v12  ;;  %v4755_v11 = vld [vmem:[#allocation2 + $0x790] sm:$0xf] }
 0x206   :  { %2522 = vmatpush.bf16.msra.mxu1 %v4368_v19  ;;  %2535 = vmatpush.bf16.msra.mxu2 %v4656_v21  ;;  %v5387_v12 = vld [vmem:[#allocation2 + $0x7ac] sm:$0xf0] }
 0x207   :  { %v4756_v18 = vor.u32 %v5387_v12, %v4755_v11  ;;  %v4083_v19 = vld [vmem:[#allocation2 + $0x250] sm:$0xf]  ;;  %v3928_v11 = vor.u32 %v5175_v3, %v3925_v4  ;;  %v3800_v3 = vor.u32 %v5143_v52, %v3797_v54  ;;  %v3899_v52 = vld [vmem:[#allocation2 + $0xd8] sm:$0xf] }
 0x208   :  { %v5219_v21 = vld [vmem:[#allocation2 + $0x26c] sm:$0xf0]  ;;  %v5172_v54 = vld [vmem:[#allocation2 + $0xf4] sm:$0xf0] }
 0x209   :  { %2547 = vmatpush.bf16.msra.mxu3 %v3956_v23  ;;  %2560 = vmatpush.bf16.msrb.mxu0 %v4244_v24  ;;  %v4723_v23 = vld [vmem:[#allocation2 + $0x750] sm:$0xf]  ;;  %v4084_v28 = vor.u32 %v5219_v21, %v4083_v19  ;;  %v5327_v19 = vld [vmem:[#allocation2 + $0x5d4] sm:$0xf] }
 0x20a   :  { %2523 = vmatpush.bf16.msra.mxu1 %v4336_v31  ;;  %2536 = vmatpush.bf16.msra.mxu2 %v4624_v32  ;;  %v5379_v24 = vld [vmem:[#allocation2 + $0x76c] sm:$0xf0]  ;;  %v4533_v21 = vld [vmem:[#allocation2 + $0x5f0] sm:$0xf0] }
 0x20b   :  { %v4724_v31 = vor.u32 %v5379_v24, %v4723_v23  ;;  %v5211_v32 = vld [vmem:[#allocation2 + $0x22c] sm:$0xf0]  ;;  %v3896_v24 = vor.u32 %v5167_v15, %v3893_v16  ;;  %v5196_v15 = vld [vmem:[#allocation2 + $0x1b4] sm:$0xf0] }
 0x20c   :  { %v5299_v34 = vld [vmem:[#allocation2 + $0x4ec] sm:$0xf0]  ;;  %v4052_v43 = vor.u32 %v5211_v32, %v4051_v29  ;;  %v4536_v29 = vor.u32 %v5327_v19, %v4533_v21  ;;  %v5319_v32 = vld [vmem:[#allocation2 + $0x594] sm:$0xf]  ;;  %v4283_v16 = vld [vmem:[#allocation2 + $0x3d8] sm:$0xf] }
 0x20d   :  { %2548 = vmatpush.bf16.msra.mxu3 %v3924_v35  ;;  %2561 = vmatpush.bf16.msrb.mxu0 %v4212_v36  ;;  %v4024_v35 = vor.u32 %v5199_v25, %v4021_v26  ;;  %v4691_v36 = vld [vmem:[#allocation2 + $0x710] sm:$0xf]  ;;  %v4404_v44 = vor.u32 %v5299_v34, %v4403_v33  ;;  %v4501_v33 = vld [vmem:[#allocation2 + $0x5b0] sm:$0xf0] }
 0x20e   :  { %2524 = vmatpush.bf16.msra.mxu1 %v4304_v46  ;;  %2537 = vmatpush.bf16.msra.mxu2 %v4592_v47  ;;  %v5371_v37 = vld [vmem:[#allocation2 + $0x72c] sm:$0xf0]  ;;  %v5391_v34 = vld [vmem:[#allocation2 + $0x7d4] sm:$0xf] }
 0x20f   :  { %v4692_v45 = vor.u32 %v5371_v37, %v4691_v36  ;;  %v4371_v46 = vld [vmem:[#allocation2 + $0x490] sm:$0xf] }
 0x210   :  { %v5291_v47 = vld [vmem:[#allocation2 + $0x4ac] sm:$0xf0] }
 0x211   :  { %2549 = vmatpush.bf16.msra.mxu3 %v3892_v49  ;;  %2562 = vmatpush.bf16.msrb.mxu0 %v4180_v50  ;;  %v4280_v49 = vor.u32 %v5263_v41, %v4277_v42  ;;  %v4659_v50 = vld [vmem:[#allocation2 + $0x6d0] sm:$0xf]  ;;  %v4372_v58 = vor.u32 %v5291_v47, %v4371_v46  ;;  %v3829_v41 = vld [vmem:[#allocation2 + $0x70] sm:$0xf0]  ;;  %v4504_v42 = vor.u32 %v5319_v32, %v4501_v33 }
 0x212   :  { %2573 = vmatpush.bf16.msrb.mxu1 %v4532_v56  ;;  %2538 = vmatpush.bf16.msra.mxu2 %v4560_v63  ;;  %v5363_v51 = vld [vmem:[#allocation2 + $0x6ec] sm:$0xf0]  ;;  %v5255_v56 = vld [vmem:[#allocation2 + $0x394] sm:$0xf] }
 0x213   :  { %2525 = vmatmul.bf16.vlgmr.msra.gmra.mxu1 %v6083_v40  ;;  %v4660_v59 = vor.u32 %v5363_v51, %v4659_v50  ;;  %v4339_v60 = vld [vmem:[#allocation2 + $0x450] sm:$0xf]  ;;  %v4248_v63 = vor.u32 %v5255_v56, %v4245_v57  ;;  %v5311_v46 = vld [vmem:[#allocation2 + $0x554] sm:$0xf]  ;;  %v3832_v50 = vor.u32 %v5151_v39, %v3829_v41  ;;  %v3931_v39 = vld [vmem:[#allocation2 + $0x118] sm:$0xf] }
 0x214   :  { %v5283_v61 = vld [vmem:[#allocation2 + $0x46c] sm:$0xf0]  ;;  %v4469_v47 = vld [vmem:[#allocation2 + $0x570] sm:$0xf0]  ;;  %v5180_v41 = vld [vmem:[#allocation2 + $0x134] sm:$0xf0] }
 0x215   :  { %2550 = vmatpush.bf16.msra.mxu3 %v3860_v1  ;;  %2563 = vmatpush.bf16.msrb.mxu0 %v4148_v2  ;;  %v4627_v1 = vld [vmem:[#allocation2 + $0x690] sm:$0xf]  ;;  %v4340_v7 = vor.u32 %v5283_v61, %v4339_v60  ;;  %v4472_v56 = vor.u32 %v5311_v46, %v4469_v47  ;;  %v5303_v60 = vld [vmem:[#allocation2 + $0x514] sm:$0xf] }
 0x216   :  { %2574 = vmatpush.bf16.msrb.mxu1 %v4500_v5  ;;  %2587 = vmatpush.bf16.msrb.mxu2 %v4788_v6  ;;  %v5355_v2 = vld [vmem:[#allocation2 + $0x6ac] sm:$0xf0]  ;;  %v5247_v5 = vld [vmem:[#allocation2 + $0x354] sm:$0xf] }
 0x217   :  { %2539 = vmatmul.bf16.vlgmr.msra.gmra.mxu2 %v6087_v55  ;;  %v4213_v6 = vld [vmem:[#allocation2 + $0x370] sm:$0xf0]  ;;  %v4628_v8 = vor.u32 %v5355_v2, %v4627_v1  ;;  %v4307_v9 = vld [vmem:[#allocation2 + $0x410] sm:$0xf]  ;;  %v4027_v1 = vld [vmem:[#allocation2 + $0x1d8] sm:$0xf] }
 0x218   :  { %v5275_v10 = vld [vmem:[#allocation2 + $0x42c] sm:$0xf0]  ;;  %v4216_v12 = vor.u32 %v5247_v5, %v4213_v6  ;;  %v4437_v61 = vld [vmem:[#allocation2 + $0x530] sm:$0xf0]  ;;  %v5204_v2 = vld [vmem:[#allocation2 + $0x1f4] sm:$0xf0] }
 0x219   :  { %2551 = vmatpush.bf16.msra.mxu3 %v3828_v13  ;;  %2564 = vmatpush.bf16.msrb.mxu0 %v4116_v14  ;;  %v4595_v13 = vld [vmem:[#allocation2 + $0x650] sm:$0xf]  ;;  %v4308_v22 = vor.u32 %v5275_v10, %v4307_v9  ;;  %v5207_v5 = vld [vmem:[#allocation2 + $0x214] sm:$0xf]  ;;  %v4440_v6 = vor.u32 %v5303_v60, %v4437_v61 }
 0x21a   :  { %2575 = vmatpush.bf16.msrb.mxu1 %v4468_v17  ;;  %2588 = vmatpush.bf16.msrb.mxu2 %v4756_v18  ;;  %v5347_v14 = vld [vmem:[#allocation2 + $0x66c] sm:$0xf0]  ;;  %v5239_v17 = vld [vmem:[#allocation2 + $0x314] sm:$0xf] }
 0x21b   :  { %v4181_v18 = vld [vmem:[#allocation2 + $0x330] sm:$0xf0]  ;;  %v4596_v20 = vor.u32 %v5347_v14, %v4595_v13  ;;  %v4563_v23 = vld [vmem:[#allocation2 + $0x610] sm:$0xf]  ;;  %v3995_v14 = vld [vmem:[#allocation2 + $0x198] sm:$0xf] }
 0x21c   :  { %v4184_v25 = vor.u32 %v5239_v17, %v4181_v18  ;;  %v5339_v26 = vld [vmem:[#allocation2 + $0x62c] sm:$0xf0]  ;;  %v5295_v9 = vld [vmem:[#allocation2 + $0x4d4] sm:$0xf]  ;;  %v5268_v17 = vld [vmem:[#allocation2 + $0x3f4] sm:$0xf0] }
 0x21d   :  { %2552 = vmatpush.bf16.msra.mxu3 %v3796_v27  ;;  %2565 = vmatpush.bf16.msrb.mxu0 %v4084_v28  ;;  %v5159_v27 = vld [vmem:[#allocation2 + $0x94] sm:$0xf]  ;;  %v4564_v36 = vor.u32 %v5339_v26, %v4563_v23  ;;  %v3996_v23 = vor.u32 %v5196_v15, %v3995_v14  ;;  %v3835_v15 = vld [vmem:[#allocation2 + $0x58] sm:$0xf] }
 0x21e   :  { %2576 = vmatpush.bf16.msrb.mxu1 %v4436_v30  ;;  %2589 = vmatpush.bf16.msrb.mxu2 %v4724_v31  ;;  %v3861_v28 = vld [vmem:[#allocation2 + $0xb0] sm:$0xf0] }
 0x21f   :  { %v5231_v30 = vld [vmem:[#allocation2 + $0x2d4] sm:$0xf]  ;;  %v3864_v37 = vor.u32 %v5159_v27, %v3861_v28  ;;  %v3963_v27 = vld [vmem:[#allocation2 + $0x158] sm:$0xf] }
 0x220   :  { %2553 = vmatmul.bf16.vlgmr.msra.gmra.mxu3 %v6076_v53  ;;  %v4149_v31 = vld [vmem:[#allocation2 + $0x2f0] sm:$0xf0]  ;;  %v5188_v28 = vld [vmem:[#allocation2 + $0x174] sm:$0xf0] }
 0x221   :  { %2601 = vmatpush.bf16.msrb.mxu3 %v4024_v35  ;;  %2566 = vmatpush.bf16.msrb.mxu0 %v4052_v43  ;;  %v4789_v35 = vld [vmem:[#allocation2 + $0x7f0] sm:$0xf0]  ;;  %v4152_v38 = vor.u32 %v5231_v30, %v4149_v31  ;;  %v5260_v30 = vld [vmem:[#allocation2 + $0x3b4] sm:$0xf0] }
 0x222   :  { %2577 = vmatpush.bf16.msrb.mxu1 %v4404_v44  ;;  %2590 = vmatpush.bf16.msrb.mxu2 %v4692_v45  ;;  %v4792_v43 = vor.u32 %v5391_v34, %v4789_v35  ;;  %v5223_v44 = vld [vmem:[#allocation2 + $0x294] sm:$0xf]  ;;  %v3964_v35 = vor.u32 %v5188_v28, %v3963_v27  ;;  %v3803_v27 = vld [vmem:[#allocation2 + $0x18] sm:$0xf] }
 0x223   :  { %v4117_v45 = vld [vmem:[#allocation2 + $0x2b0] sm:$0xf0]  ;;  %v5148_v28 = vld [vmem:[#allocation2 + $0x34] sm:$0xf0] }
 0x224   :  { %2567 = vmatmul.bf16.vlgmr.msrb.gmra.mxu0 %v6080_v0  ;;  %v4120_v51 = vor.u32 %v5223_v44, %v4117_v45  ;;  %v4405_v10 = vld [vmem:[#allocation2 + $0x4f0] sm:$0xf0] }
 0x225   :  { %2602 = vmatpush.bf16.msrb.mxu3 %v3992_v48  ;;  %2615 = vmatpush.bf16.msra.mxu0 %v4280_v49  ;;  %v5383_v48 = vld [vmem:[#allocation2 + $0x794] sm:$0xf]  ;;  %v4408_v19 = vor.u32 %v5295_v9, %v4405_v10  ;;  %v5324_v9 = vld [vmem:[#allocation2 + $0x5b4] sm:$0xf0] }
 0x226   :  { %2578 = vmatpush.bf16.msrb.mxu1 %v4372_v58  ;;  %2591 = vmatpush.bf16.msrb.mxu2 %v4660_v59  ;;  %v4757_v49 = vld [vmem:[#allocation2 + $0x7b0] sm:$0xf0]  ;;  %v4795_v10 = vld [vmem:[#allocation2 + $0x7d8] sm:$0xf] }
 0x227   :  { %v4760_v57 = vor.u32 %v5383_v48, %v4757_v49  ;;  %v5215_v58 = vld [vmem:[#allocation2 + $0x254] sm:$0xf]  ;;  %v3932_v48 = vor.u32 %v5180_v41, %v3931_v39  ;;  %v4029_v39 = vld [vmem:[#allocation2 + $0x1f8] sm:$0xf0]  ;;  %v3804_v41 = vor.u32 %v5148_v28, %v3803_v27  ;;  %v5276_v27 = vld [vmem:[#allocation2 + $0x434] sm:$0xf0] }
 0x228   :  { %v4085_v59 = vld [vmem:[#allocation2 + $0x270] sm:$0xf0] }
 0x229   :  { %2603 = vmatpush.bf16.msrb.mxu3 %v3960_v62  ;;  %2616 = vmatpush.bf16.msra.mxu0 %v4248_v63  ;;  %v5375_v62 = vld [vmem:[#allocation2 + $0x754] sm:$0xf]  ;;  %v4088_v4 = vor.u32 %v5215_v58, %v4085_v59  ;;  %v4539_v58 = vld [vmem:[#allocation2 + $0x5d8] sm:$0xf] }
 0x22a   :  { %2579 = vmatpush.bf16.msrb.mxu1 %v4340_v7  ;;  %2592 = vmatpush.bf16.msrb.mxu2 %v4628_v8  ;;  %v4725_v63 = vld [vmem:[#allocation2 + $0x770] sm:$0xf0]  ;;  %v5332_v59 = vld [vmem:[#allocation2 + $0x5f4] sm:$0xf0] }
 0x22b   :  { %v4728_v7 = vor.u32 %v5375_v62, %v4725_v63  ;;  %v4053_v8 = vld [vmem:[#allocation2 + $0x230] sm:$0xf0]  ;;  %v3900_v63 = vor.u32 %v5172_v54, %v3899_v52  ;;  %v5192_v52 = vld [vmem:[#allocation2 + $0x19c] sm:$0xf] }
 0x22c   :  { %v4693_v13 = vld [vmem:[#allocation2 + $0x730] sm:$0xf0]  ;;  %v4056_v18 = vor.u32 %v5207_v5, %v4053_v8  ;;  %v4540_v5 = vor.u32 %v5332_v59, %v4539_v58  ;;  %v4507_v8 = vld [vmem:[#allocation2 + $0x598] sm:$0xf]  ;;  %v3997_v54 = vld [vmem:[#allocation2 + $0x1b8] sm:$0xf0] }
 0x22d   :  { %2604 = vmatpush.bf16.msrb.mxu3 %v3928_v11  ;;  %2617 = vmatpush.bf16.msra.mxu0 %v4216_v12  ;;  %v4028_v11 = vor.u32 %v5204_v2, %v4027_v1  ;;  %v5367_v12 = vld [vmem:[#allocation2 + $0x714] sm:$0xf] }
 0x22e   :  { %2580 = vmatpush.bf16.msrb.mxu1 %v4308_v22  ;;  %2593 = vmatpush.bf16.msrb.mxu2 %v4596_v20  ;;  %v4696_v21 = vor.u32 %v5367_v12, %v4693_v13  ;;  %v5287_v22 = vld [vmem:[#allocation2 + $0x494] sm:$0xf] }
 0x22f   :  { %v4373_v20 = vld [vmem:[#allocation2 + $0x4b0] sm:$0xf0] }
 0x230   :  { %v4661_v26 = vld [vmem:[#allocation2 + $0x6f0] sm:$0xf0]  ;;  %v4376_v31 = vor.u32 %v5287_v22, %v4373_v20  ;;  %v4475_v22 = vld [vmem:[#allocation2 + $0x558] sm:$0xf] }
 0x231   :  { %2605 = vmatpush.bf16.msrb.mxu3 %v3896_v24  ;;  %2618 = vmatpush.bf16.msra.mxu0 %v4184_v25  ;;  %v4284_v24 = vor.u32 %v5268_v17, %v4283_v16  ;;  %v5359_v25 = vld [vmem:[#allocation2 + $0x6d4] sm:$0xf]  ;;  %v5156_v16 = vld [vmem:[#allocation2 + $0x74] sm:$0xf0]  ;;  %v4508_v17 = vor.u32 %v5324_v9, %v4507_v8  ;;  %v5256_v8 = vld [vmem:[#allocation2 + $0x39c] sm:$0xf] }
 0x232   :  { %2629 = vmatpush.bf16.msra.mxu1 %v4536_v29  ;;  %2594 = vmatpush.bf16.msrb.mxu2 %v4564_v36  ;;  %v4251_v29 = vld [vmem:[#allocation2 + $0x398] sm:$0xf]  ;;  %v4664_v32 = vor.u32 %v5359_v25, %v4661_v26  ;;  %v5279_v33 = vld [vmem:[#allocation2 + $0x454] sm:$0xf]  ;;  %v3836_v25 = vor.u32 %v5156_v16, %v3835_v15  ;;  %v4253_v9 = vld [vmem:[#allocation2 + $0x3b8] sm:$0xf0] }
 0x233   :  { %2581 = vmatmul.bf16.vlgmr.msrb.gmra.mxu1 %v6083_v40  ;;  %v4341_v34 = vld [vmem:[#allocation2 + $0x470] sm:$0xf0]  ;;  %v4252_v36 = vor.u32 %v5260_v30, %v4251_v29  ;;  %v5316_v20 = vld [vmem:[#allocation2 + $0x574] sm:$0xf0]  ;;  %v4256_v16 = vor.u32 %v5256_v8, %v4253_v9  ;;  %v4125_v8 = vld [vmem:[#allocation2 + $0x2b8] sm:$0xf0] }
 0x234   :  { %v4344_v44 = vor.u32 %v5279_v33, %v4341_v34  ;;  %v5271_v46 = vld [vmem:[#allocation2 + $0x414] sm:$0xf]  ;;  %v4476_v29 = vor.u32 %v5316_v20, %v4475_v22  ;;  %v4443_v33 = vld [vmem:[#allocation2 + $0x518] sm:$0xf]  ;;  %v3933_v22 = vld [vmem:[#allocation2 + $0x138] sm:$0xf0] }
 0x235   :  { %2606 = vmatpush.bf16.msrb.mxu3 %v3864_v37  ;;  %2619 = vmatpush.bf16.msra.mxu0 %v4152_v38  ;;  %v5351_v37 = vld [vmem:[#allocation2 + $0x694] sm:$0xf]  ;;  %v5308_v34 = vld [vmem:[#allocation2 + $0x534] sm:$0xf0]  ;;  %v5248_v20 = vld [vmem:[#allocation2 + $0x35c] sm:$0xf] }
 0x236   :  { %2630 = vmatpush.bf16.msra.mxu1 %v4504_v42  ;;  %2643 = vmatpush.bf16.msra.mxu2 %v4792_v43  ;;  %v4629_v38 = vld [vmem:[#allocation2 + $0x6b0] sm:$0xf0]  ;;  %v4219_v42 = vld [vmem:[#allocation2 + $0x358] sm:$0xf]  ;;  %v5312_v9 = vld [vmem:[#allocation2 + $0x55c] sm:$0xf] }
 0x237   :  { %2595 = vmatmul.bf16.vlgmr.msrb.gmra.mxu2 %v6087_v55  ;;  %v5252_v43 = vld [vmem:[#allocation2 + $0x374] sm:$0xf0]  ;;  %v4632_v45 = vor.u32 %v5351_v37, %v4629_v38  ;;  %v4309_v47 = vld [vmem:[#allocation2 + $0x430] sm:$0xf0]  ;;  %v5200_v38 = vld [vmem:[#allocation2 + $0x1dc] sm:$0xf] }
 0x238   :  { %v4220_v49 = vor.u32 %v5252_v43, %v4219_v42  ;;  %v4312_v60 = vor.u32 %v5271_v46, %v4309_v47  ;;  %v5335_v62 = vld [vmem:[#allocation2 + $0x614] sm:$0xf]  ;;  %v4059_v43 = vld [vmem:[#allocation2 + $0x218] sm:$0xf] }
 0x239   :  { %2607 = vmatpush.bf16.msrb.mxu3 %v3832_v50  ;;  %2620 = vmatpush.bf16.msra.mxu0 %v4120_v51  ;;  %v5343_v50 = vld [vmem:[#allocation2 + $0x654] sm:$0xf]  ;;  %v5212_v46 = vld [vmem:[#allocation2 + $0x234] sm:$0xf0] }
 0x23a   :  { %2631 = vmatpush.bf16.msra.mxu1 %v4472_v56  ;;  %2644 = vmatpush.bf16.msra.mxu2 %v4760_v57  ;;  %v4597_v51 = vld [vmem:[#allocation2 + $0x670] sm:$0xf0]  ;;  %v4187_v56 = vld [vmem:[#allocation2 + $0x318] sm:$0xf]  ;;  %v4060_v58 = vor.u32 %v5212_v46, %v4059_v43 }
 0x23b   :  { %v5244_v57 = vld [vmem:[#allocation2 + $0x334] sm:$0xf0]  ;;  %v4600_v61 = vor.u32 %v5343_v50, %v4597_v51  ;;  %v4565_v2 = vld [vmem:[#allocation2 + $0x630] sm:$0xf0] }
 0x23c   :  { %v4188_v1 = vor.u32 %v5244_v57, %v4187_v56  ;;  %v4568_v12 = vor.u32 %v5335_v62, %v4565_v2  ;;  %v4411_v47 = vld [vmem:[#allocation2 + $0x4d8] sm:$0xf]  ;;  %v5264_v56 = vld [vmem:[#allocation2 + $0x3dc] sm:$0xf]  ;;  %v4000_v2 = vor.u32 %v5192_v52, %v3997_v54 }
 0x23d   :  { %2608 = vmatpush.bf16.msrb.mxu3 %v3800_v3  ;;  %2621 = vmatpush.bf16.msra.mxu0 %v4088_v4  ;;  %v3867_v3 = vld [vmem:[#allocation2 + $0x98] sm:$0xf]  ;;  %v4285_v57 = vld [vmem:[#allocation2 + $0x3f8] sm:$0xf0] }
 0x23e   :  { %2632 = vmatpush.bf16.msra.mxu1 %v4440_v6  ;;  %2645 = vmatpush.bf16.msra.mxu2 %v4728_v7  ;;  %v5164_v4 = vld [vmem:[#allocation2 + $0xb4] sm:$0xf0]  ;;  %v5232_v52 = vld [vmem:[#allocation2 + $0x2dc] sm:$0xf] }
 0x23f   :  { %v4155_v6 = vld [vmem:[#allocation2 + $0x2d8] sm:$0xf]  ;;  %v3868_v13 = vor.u32 %v5164_v4, %v3867_v3  ;;  %v4288_v3 = vor.u32 %v5264_v56, %v4285_v57  ;;  %v4157_v54 = vld [vmem:[#allocation2 + $0x2f8] sm:$0xf0] }
 0x240   :  { %2609 = vmatmul.bf16.vlgmr.msrb.gmra.mxu3 %v6076_v53  ;;  %v5236_v7 = vld [vmem:[#allocation2 + $0x2f4] sm:$0xf0]  ;;  %v5320_v56 = vld [vmem:[#allocation2 + $0x59c] sm:$0xf] }
 0x241   :  { %2657 = vmatpush.bf16.msra.mxu3 %v4028_v11  ;;  %2622 = vmatpush.bf16.msra.mxu0 %v4056_v18  ;;  %v5396_v11 = vld [vmem:[#allocation2 + $0x7f4] sm:$0xf0]  ;;  %v4156_v14 = vor.u32 %v5236_v7, %v4155_v6  ;;  %v6111_v59 = vpop.f32.mrf.mxu0  ;;  %v5184_v6 = vld [vmem:[#allocation2 + $0x15c] sm:$0xf] }
 0x242   :  { %2633 = vmatpush.bf16.msra.mxu1 %v4408_v19  ;;  %2646 = vmatpush.bf16.msra.mxu2 %v4696_v21  ;;  %v4796_v18 = vor.u32 %v5396_v11, %v4795_v10  ;;  %v4123_v19 = vld [vmem:[#allocation2 + $0x298] sm:$0xf]  ;;  %v3965_v7 = vld [vmem:[#allocation2 + $0x178] sm:$0xf0] }
 0x243   :  { %v5228_v21 = vld [vmem:[#allocation2 + $0x2b4] sm:$0xf0]  ;;  %v6109_v37 = vpop.f32.mrf.mxu3  ;;  %v3968_v15 = vor.u32 %v5184_v6, %v3965_v7  ;;  %v4509_v57 = vld [vmem:[#allocation2 + $0x5b8] sm:$0xf0] }
 0x244   :  { %2623 = vmatmul.bf16.vlgmr.msra.gmra.mxu0 %v6080_v0  ;;  %v4124_v26 = vor.u32 %v5228_v21, %v4123_v19  ;;  %v4699_v50 = vld [vmem:[#allocation2 + $0x718] sm:$0xf]  ;;  %v5176_v19 = vld [vmem:[#allocation2 + $0x11c] sm:$0xf] }
 0x245   :  { %2658 = vmatpush.bf16.msra.mxu3 %v3996_v23  ;;  %2671 = vmatpush.bf16.msrb.mxu0 %v4284_v24  ;;  %v4763_v23 = vld [vmem:[#allocation2 + $0x798] sm:$0xf]  ;;  %v3936_v28 = vor.u32 %v5176_v19, %v3933_v22  ;;  %v5224_v7 = vld [vmem:[#allocation2 + $0x29c] sm:$0xf] }
 0x246   :  { %2634 = vmatpush.bf16.msra.mxu1 %v4376_v31  ;;  %2647 = vmatpush.bf16.msra.mxu2 %v4664_v32  ;;  %v5388_v24 = vld [vmem:[#allocation2 + $0x7b4] sm:$0xf0]  ;;  %v3805_v19 = vld [vmem:[#allocation2 + $0x38] sm:$0xf0] }
 0x247   :  { %v4764_v30 = vor.u32 %v5388_v24, %v4763_v23  ;;  %v4091_v31 = vld [vmem:[#allocation2 + $0x258] sm:$0xf]  ;;  %v4221_v23 = vld [vmem:[#allocation2 + $0x378] sm:$0xf0] }
 0x248   :  { %v5220_v32 = vld [vmem:[#allocation2 + $0x274] sm:$0xf0] }
 0x249   :  { %2659 = vmatpush.bf16.msra.mxu3 %v3964_v35  ;;  %2672 = vmatpush.bf16.msrb.mxu0 %v4252_v36  ;;  %v4731_v35 = vld [vmem:[#allocation2 + $0x758] sm:$0xf]  ;;  %v4092_v42 = vor.u32 %v5220_v32, %v4091_v31  ;;  %v5168_v32 = vld [vmem:[#allocation2 + $0xdc] sm:$0xf] }
 0x24a   :  { %2635 = vmatpush.bf16.msra.mxu1 %v4344_v44  ;;  %2648 = vmatpush.bf16.msra.mxu2 %v4632_v45  ;;  %v5380_v36 = vld [vmem:[#allocation2 + $0x774] sm:$0xf0]  ;;  %v4444_v44 = vor.u32 %v5308_v34, %v4443_v33  ;;  %v6121_v33 = vpop.f32.mrf.mxu0 }
 0x24b   :  { %v4732_v45 = vor.u32 %v5380_v36, %v4731_v35  ;;  %v5372_v51 = vld [vmem:[#allocation2 + $0x734] sm:$0xf0]  ;;  %v6116_v10 = vpop.f32.mrf.mxu3  ;;  %v3901_v35 = vld [vmem:[#allocation2 + $0xf8] sm:$0xf0] }
 0x24c   :  { %v4700_v62 = vor.u32 %v5372_v51, %v4699_v50  ;;  %v4667_v4 = vld [vmem:[#allocation2 + $0x6d8] sm:$0xf]  ;;  %v5240_v36 = vld [vmem:[#allocation2 + $0x31c] sm:$0xf] }
 0x24d   :  { %2660 = vmatpush.bf16.msra.mxu3 %v3932_v48  ;;  %2673 = vmatpush.bf16.msrb.mxu0 %v4220_v49  ;;  %v5300_v48 = vld [vmem:[#allocation2 + $0x4f4] sm:$0xf0]  ;;  %v4032_v49 = vor.u32 %v5200_v38, %v4029_v39  ;;  %v4189_v38 = vld [vmem:[#allocation2 + $0x338] sm:$0xf0] }
 0x24e   :  { %2636 = vmatpush.bf16.msra.mxu1 %v4312_v60  ;;  %2649 = vmatpush.bf16.msra.mxu2 %v4600_v61  ;;  %v6113_v60 = vpop.f32.mrf.mxu1  ;;  %v4412_v61 = vor.u32 %v5300_v48, %v4411_v47  ;;  %v5348_v31 = vld [vmem:[#allocation2 + $0x674] sm:$0xf0]  ;;  %v5328_v39 = vld [vmem:[#allocation2 + $0x5dc] sm:$0xf]  ;;  %v4192_v46 = vor.u32 %v5240_v36, %v4189_v38 }
 0x24f   :  { %v5340_v47 = vld [vmem:[#allocation2 + $0x634] sm:$0xf0]  ;;  %v5160_v48 = vld [vmem:[#allocation2 + $0x9c] sm:$0xf] }
 0x251   :  { %2661 = vmatpush.bf16.msra.mxu3 %v3900_v63  ;;  %2674 = vmatpush.bf16.msrb.mxu0 %v4188_v1  ;;  %v4379_v63 = vld [vmem:[#allocation2 + $0x498] sm:$0xf] }
 0x252   :  { %2685 = vmatpush.bf16.msrb.mxu1 %v4540_v5  ;;  %2650 = vmatpush.bf16.msra.mxu2 %v4568_v12  ;;  %v5292_v1 = vld [vmem:[#allocation2 + $0x4b4] sm:$0xf0] }
 0x253   :  { %2637 = vmatmul.bf16.vlgmr.msra.gmra.mxu1 %v6083_v40  ;;  %v5364_v5 = vld [vmem:[#allocation2 + $0x6f4] sm:$0xf0]  ;;  %v4380_v11 = vor.u32 %v5292_v1, %v4379_v63  ;;  %v6125_v50 = vpop.f32.mrf.mxu3 }
 0x254   :  { %v4668_v12 = vor.u32 %v5364_v5, %v4667_v4  ;;  %v3837_v4 = vld [vmem:[#allocation2 + $0x78] sm:$0xf0]  ;;  %v4512_v5 = vor.u32 %v5320_v56, %v4509_v57 }
 0x255   :  { %2662 = vmatpush.bf16.msra.mxu3 %v3868_v13  ;;  %2675 = vmatpush.bf16.msrb.mxu0 %v4156_v14  ;;  %v4347_v13 = vld [vmem:[#allocation2 + $0x458] sm:$0xf]  ;;  %v5288_v56 = vld [vmem:[#allocation2 + $0x49c] sm:$0xf] }
 0x256   :  { %2686 = vmatpush.bf16.msrb.mxu1 %v4508_v17  ;;  %2699 = vmatpush.bf16.msrb.mxu2 %v4796_v18  ;;  %v5284_v14 = vld [vmem:[#allocation2 + $0x474] sm:$0xf0]  ;;  %v6123_v34 = vpop.f32.mrf.mxu1  ;;  %v4381_v57 = vld [vmem:[#allocation2 + $0x4b8] sm:$0xf0] }
 0x257   :  { %2651 = vmatmul.bf16.vlgmr.msra.gmra.mxu2 %v6087_v55  ;;  %v4635_v17 = vld [vmem:[#allocation2 + $0x698] sm:$0xf]  ;;  %v6118_v21 = vpop.f32.mrf.mxu2  ;;  %v4348_v24 = vor.u32 %v5284_v14, %v4347_v13  ;;  %v4765_v13 = vld [vmem:[#allocation2 + $0x7b8] sm:$0xf0]  ;;  %v6130_v14 = vpop.f32.mrf.mxu0 }
 0x258   :  { %v5356_v18 = vld [vmem:[#allocation2 + $0x6b4] sm:$0xf0] }
 0x259   :  { %2663 = vmatpush.bf16.msra.mxu3 %v3836_v25  ;;  %2676 = vmatpush.bf16.msrb.mxu0 %v4124_v26  ;;  %v4636_v25 = vor.u32 %v5356_v18, %v4635_v17  ;;  %v4315_v26 = vld [vmem:[#allocation2 + $0x418] sm:$0xf]  ;;  %v4128_v17 = vor.u32 %v5224_v7, %v4125_v8  ;;  %v5144_v18 = vld [vmem:[#allocation2 + $0x1c] sm:$0xf] }
 0x25a   :  { %2687 = vmatpush.bf16.msrb.mxu1 %v4476_v29  ;;  %2700 = vmatpush.bf16.msrb.mxu2 %v4764_v30  ;;  %v4224_v29 = vor.u32 %v5248_v20, %v4221_v23  ;;  %v4603_v30 = vld [vmem:[#allocation2 + $0x658] sm:$0xf]  ;;  %v5216_v23 = vld [vmem:[#allocation2 + $0x25c] sm:$0xf] }
 0x25b   :  { %v4604_v43 = vor.u32 %v5348_v31, %v4603_v30  ;;  %v3808_v30 = vor.u32 %v5144_v18, %v3805_v19  ;;  %v5352_v7 = vld [vmem:[#allocation2 + $0x69c] sm:$0xf] }
 0x25c   :  { %v4637_v8 = vld [vmem:[#allocation2 + $0x6b8] sm:$0xf0] }
 0x25d   :  { %2664 = vmatpush.bf16.msra.mxu3 %v3804_v41  ;;  %2677 = vmatpush.bf16.msrb.mxu0 %v4092_v42  ;;  %v4541_v41 = vld [vmem:[#allocation2 + $0x5f8] sm:$0xf0]  ;;  %v4316_v42 = vor.u32 %v5276_v27, %v4315_v26 }
 0x25e   :  { %2688 = vmatpush.bf16.msrb.mxu1 %v4444_v44  ;;  %2701 = vmatpush.bf16.msrb.mxu2 %v4732_v45  ;;  %v4571_v44 = vld [vmem:[#allocation2 + $0x618] sm:$0xf]  ;;  %v3904_v45 = vor.u32 %v5168_v32, %v3901_v35  ;;  %v4544_v51 = vor.u32 %v5328_v39, %v4541_v41  ;;  %v4445_v26 = vld [vmem:[#allocation2 + $0x538] sm:$0xf0] }
 0x25f   :  { %v4572_v63 = vor.u32 %v5340_v47, %v4571_v44  ;;  %v5376_v27 = vld [vmem:[#allocation2 + $0x75c] sm:$0xf]  ;;  %v6142_v47 = vpop.f32.mrf.mxu0 }
 0x260   :  { %2665 = vmatmul.bf16.vlgmr.msra.gmra.mxu3 %v6076_v53  ;;  %v5404_v32 = vld [vmem:[%s6400_s9 + $0x38] sm:$0xff] }
 0x261   :  { %2713 = vmatpush.bf16.msrb.mxu3 %v4032_v49  ;;  %2678 = vmatpush.bf16.msrb.mxu0 %v4060_v58  ;;  %v3869_v49 = vld [vmem:[#allocation2 + $0xb8] sm:$0xf0] }
 0x262   :  { %2689 = vmatpush.bf16.msrb.mxu1 %v4412_v61  ;;  %2702 = vmatpush.bf16.msrb.mxu2 %v4700_v62  ;;  %v5392_v58 = vld [vmem:[#allocation2 + $0x7dc] sm:$0xf]  ;;  %v6127_v62 = vpop.f32.mrf.mxu2  ;;  %v3872_v1 = vor.u32 %v5160_v48, %v3869_v49 }
 0x263   :  { %v4797_v61 = vld [vmem:[#allocation2 + $0x7f8] sm:$0xf0] }
 0x264   :  { %2679 = vmatmul.bf16.vlgmr.msrb.gmra.mxu0 %v6080_v0  ;;  %v4800_v6 = vor.u32 %v5392_v58, %v4797_v61  ;;  %v5208_v39 = vld [vmem:[#allocation2 + $0x21c] sm:$0xf] }
 0x265   :  { %2714 = vmatpush.bf16.msrb.mxu3 %v4000_v2  ;;  %2727 = vmatpush.bf16.msra.mxu0 %v4288_v3  ;;  %v4160_v2 = vor.u32 %v5232_v52, %v4157_v54  ;;  %v5152_v3 = vld [vmem:[#allocation2 + $0x5c] sm:$0xf]  ;;  %v5403_v52 = vld [vmem:[%s6400_s9 + $0x30] sm:$0xff] }
 0x266   :  { %2690 = vmatpush.bf16.msrb.mxu1 %v4380_v11  ;;  %2703 = vmatpush.bf16.msrb.mxu2 %v4668_v12  ;;  %v4477_v11 = vld [vmem:[#allocation2 + $0x578] sm:$0xf0] }
 0x267   :  { %v5384_v12 = vld [vmem:[#allocation2 + $0x79c] sm:$0xf]  ;;  %v4480_v22 = vor.u32 %v5312_v9, %v4477_v11 }
 0x268   :  { %v4768_v20 = vor.u32 %v5384_v12, %v4765_v13  ;;  %v4061_v41 = vld [vmem:[#allocation2 + $0x238] sm:$0xf0]  ;;  %v4640_v13 = vor.u32 %v5352_v7, %v4637_v8 }
 0x269   :  { %2715 = vmatpush.bf16.msrb.mxu3 %v3968_v15  ;;  %2728 = vmatpush.bf16.msra.mxu0 %v4256_v16  ;;  %v6132_v15 = vpop.f32.mrf.mxu1  ;;  %v3840_v16 = vor.u32 %v5152_v3, %v3837_v4  ;;  %v5368_v44 = vld [vmem:[#allocation2 + $0x71c] sm:$0xf]  ;;  %v5402_v4 = vld [vmem:[%s6400_s9 + $0x28] sm:$0xff] }
 0x26a   :  { %2691 = vmatpush.bf16.msrb.mxu1 %v4348_v24  ;;  %2704 = vmatpush.bf16.msrb.mxu2 %v4636_v25  ;;  %v4093_v24 = vld [vmem:[#allocation2 + $0x278] sm:$0xf0]  ;;  %v6140_v35 = vpop.f32.mrf.mxu2 }
 0x26b   :  { %v5304_v25 = vld [vmem:[#allocation2 + $0x51c] sm:$0xf]  ;;  %v4096_v31 = vor.u32 %v5216_v23, %v4093_v24  ;;  %v6177_v23 = vpop.f32.mrf.mxu0 }
 0x26c   :  { %v4448_v36 = vor.u32 %v5304_v25, %v4445_v26  ;;  %v5412_v54 = vld [vmem:[%s6400_s9 + $0x78] sm:$0xff] }
 0x26d   :  { %2716 = vmatpush.bf16.msrb.mxu3 %v3936_v28  ;;  %2729 = vmatpush.bf16.msra.mxu0 %v4224_v29  ;;  %v4733_v28 = vld [vmem:[#allocation2 + $0x778] sm:$0xf0]  ;;  %v6135_v29 = vpop.f32.mrf.mxu3 }
 0x26e   :  { %2692 = vmatpush.bf16.msrb.mxu1 %v4316_v42  ;;  %2705 = vmatpush.bf16.msrb.mxu2 %v4604_v43  ;;  %v4736_v38 = vor.u32 %v5376_v27, %v4733_v28  ;;  %v5296_v42 = vld [vmem:[#allocation2 + $0x4dc] sm:$0xf] }
 0x26f   :  { %v4413_v43 = vld [vmem:[#allocation2 + $0x4f8] sm:$0xf0] }
 0x270   :  { %v4416_v49 = vor.u32 %v5296_v42, %v4413_v43  ;;  %v5360_v58 = vld [vmem:[#allocation2 + $0x6dc] sm:$0xf] }
 0x271   :  { %2717 = vmatpush.bf16.msrb.mxu3 %v3904_v45  ;;  %2730 = vmatpush.bf16.msra.mxu0 %v4192_v46  ;;  %v4701_v45 = vld [vmem:[#allocation2 + $0x738] sm:$0xf0]  ;;  %v4064_v46 = vor.u32 %v5208_v39, %v4061_v41  ;;  %v6144_v48 = vpop.f32.mrf.mxu1 }
 0x272   :  { %2741 = vmatpush.bf16.msra.mxu1 %v4544_v51  ;;  %2706 = vmatpush.bf16.msrb.mxu2 %v4572_v63  ;;  %v4704_v51 = vor.u32 %v5368_v44, %v4701_v45  ;;  %v4669_v61 = vld [vmem:[#allocation2 + $0x6f8] sm:$0xf0]  ;;  %v6156_v63 = vld [vmem:[%s6399_s8] sm:$0xff]  ;;  %v6166_v9 = vpop.f32.mrf.mxu2 }
 0x273   :  { %2693 = vmatmul.bf16.vlgmr.msrb.gmra.mxu1 %v6083_v40  ;;  %v4672_v3 = vor.u32 %v5360_v58, %v4669_v61  ;;  %v1025_v11 = vperm.slane %v6156_v63, 0  ;;  %v5272_v18 = vld [vmem:[#allocation2 + $0x41c] sm:$0xf]  ;;  %v1026_v26 = vperm.slane %v6156_v63, 1  ;;  %v5427_v58 = vld [vmem:[%s6400_s9 + $0xf0] sm:$0xff]  ;;  %v1028_v8 = vperm.slane %v6156_v63, 3 }
 0x274   :  { %v4317_v19 = vld [vmem:[#allocation2 + $0x438] sm:$0xf0] }
 0x275   :  { %2718 = vmatpush.bf16.msrb.mxu3 %v3872_v1  ;;  %2731 = vmatpush.bf16.msra.mxu0 %v4160_v2  ;;  %v6158_v1 = vpop.f32.mrf.mxu3  ;;  %v4384_v2 = vor.u32 %v5288_v56, %v4381_v57  ;;  %v2331_v25 = vadd.f32 %v6109_v37, %v1025_v11  ;;  %v4320_v27 = vor.u32 %v5272_v18, %v4317_v19  ;;  %v5420_v39 = vld [vmem:[%s6400_s9 + $0xb8] sm:$0xff]  ;;  %v5407_v56 = vld [vmem:[%s6400_s9 + $0x50] sm:$0xff]  ;;  %v5405_v18 = vld [vmem:[%s6400_s9 + $0x40] sm:$0xff] }
 0x276   :  { %2742 = vmatpush.bf16.msra.mxu1 %v4512_v5  ;;  %2755 = vmatpush.bf16.msra.mxu2 %v4800_v6  ;;  %v5280_v5 = vld [vmem:[#allocation2 + $0x45c] sm:$0xf]  ;;  %v2387_v42 = vadd.f32 %v6125_v50, %v1026_v26 }
 0x277   :  { %2707 = vmatmul.bf16.vlgmr.msrb.gmra.mxu2 %v6087_v55  ;;  %v4349_v6 = vld [vmem:[#allocation2 + $0x478] sm:$0xf0]  ;;  %v2345_v41 = vadd.f32 %v6111_v59, %v2331_v25 }
 0x278   :  { %v4352_v12 = vor.u32 %v5280_v5, %v4349_v6 }
 0x279   :  { %2719 = vmatpush.bf16.msrb.mxu3 %v3840_v16  ;;  %2732 = vmatpush.bf16.msra.mxu0 %v4128_v17  ;;  %v5401_v16 = vld [vmem:[%s6400_s9 + $0x20] sm:$0xff]  ;;  %v5410_v17 = vld [vmem:[%s6400_s9 + $0x68] sm:$0xff]  ;;  %v6179_v24 = vpop.f32.mrf.mxu1  ;;  %v2359_v59 = vadd.f32 %v6113_v60, %v2345_v41 }
 0x27a   :  { %2743 = vmatpush.bf16.msra.mxu1 %v4480_v22  ;;  %2756 = vmatpush.bf16.msra.mxu2 %v4768_v20  ;;  %v5344_v22 = vld [vmem:[#allocation2 + $0x65c] sm:$0xf]  ;;  %v2333_v20 = vadd.f32 %v6116_v10, %v1025_v11  ;;  %v5409_v10 = vld [vmem:[%s6400_s9 + $0x60] sm:$0xff]  ;;  %v6197_v44 = vpop.f32.mrf.mxu2 }
 0x27c   :  { %v2347_v37 = vadd.f32 %v6121_v33, %v2333_v20  ;;  %v5399_v33 = vld [vmem:[%s6400_s9 + $0x10] sm:$0xff]  ;;  %v5425_v20 = vld [vmem:[%s6400_s9 + $0xe0] sm:$0xff] }
 0x27d   :  { %2720 = vmatpush.bf16.msrb.mxu3 %v3808_v30  ;;  %2733 = vmatpush.bf16.msra.mxu0 %v4096_v31  ;;  %v5400_v30 = vld [vmem:[%s6400_s9 + $0x18] sm:$0xff] }
 0x27e   :  { %2744 = vmatpush.bf16.msra.mxu1 %v4448_v36  ;;  %2757 = vmatpush.bf16.msra.mxu2 %v4736_v38  ;;  %v5336_v31 = vld [vmem:[#allocation2 + $0x61c] sm:$0xf]  ;;  %v2389_v36 = vadd.f32 %v6135_v29, %v1026_v26  ;;  %v2444_v38 = vpop.f32.mrf.mxu3  ;;  %v2361_v43 = vadd.f32 %v6123_v34, %v2347_v37  ;;  %v5435_v26 = vld [vmem:[%s6400_s9 + $0x130] sm:$0xff] }
 0x27f   :  { %v5408_v29 = vld [vmem:[%s6400_s9 + $0x58] sm:$0xff] }
 0x280   :  { %2721 = vmatmul.bf16.vlgmr.msrb.gmra.mxu3 %v6076_v53  ;;  %v5411_v53 = vld [vmem:[%s6400_s9 + $0x70] sm:$0xff]  ;;  %v2375_v50 = vadd.f32 %v6127_v62, %v2361_v43  ;;  %v2403_v34 = vadd.f32 %v6142_v47, %v2389_v36  ;;  %v2458_v62 = vpop.f32.mrf.mxu0  ;;  %v5398_v47 = vld [vmem:[%s6400_s9 + $0x8] sm:$0xff]  ;;  %v5424_v36 = vld [vmem:[%s6400_s9 + $0xd8] sm:$0xff] }
 0x281   :  { %3325 = vmatpush.bf16.msra.mxu3 %v5404_v32  ;;  %2734 = vmatpush.bf16.msra.mxu0 %v4064_v46  ;;  %v4573_v32 = vld [vmem:[#allocation2 + $0x638] sm:$0xf0]  ;;  %v5419_v46 = vld [vmem:[%s6400_s9 + $0xb0] sm:$0xff] }
 0x282   :  { %2745 = vmatpush.bf16.msra.mxu1 %v4416_v49  ;;  %2758 = vmatpush.bf16.msra.mxu2 %v4704_v51  ;;  %v4576_v45 = vor.u32 %v5336_v31, %v4573_v32  ;;  %v5428_v49 = vld [vmem:[%s6400_s9 + $0xf8] sm:$0xff]  ;;  %v2373_v51 = vadd.f32 %v6118_v21, %v2359_v59  ;;  %v2417_v60 = vadd.f32 %v6144_v48, %v2403_v34  ;;  %v2777_v21 = vmul.f32 0.2, %v2375_v50  ;;  %v5418_v48 = vld [vmem:[%s6400_s9 + $0xa8] sm:$0xff]  ;;  %v2486_v6 = vpop.f32.mrf.mxu2  ;;  %v5415_v32 = vld [vmem:[%s6400_s9 + $0x90] sm:$0xff] }
 0x283   :  { %v5423_v59 = vld [vmem:[%s6400_s9 + $0xd0] sm:$0xff] }
 0x284   :  { %2735 = vmatmul.bf16.vlgmr.msra.gmra.mxu0 %v6080_v0  ;;  %v4605_v0 = vld [vmem:[#allocation2 + $0x678] sm:$0xf0]  ;;  %v2769_v61 = vmul.f32 0.2, %v2373_v51 }
 0x285   :  { %3326 = vmatpush.bf16.msra.mxu3 %v5403_v52  ;;  %3339 = vmatpush.bf16.msrb.mxu0 %v5412_v54  ;;  %v4608_v28 = vor.u32 %v5344_v22, %v4605_v0  ;;  %v2401_v52 = vadd.f32 %v6130_v14, %v2387_v42  ;;  %v2472_v54 = vpop.f32.mrf.mxu1  ;;  %v2431_v14 = vadd.f32 %v6166_v9, %v2417_v60  ;;  %v5436_v9 = vld [vmem:[%s6400_s9 + $0x138] sm:$0xff] }
 0x286   :  { %2746 = vmatpush.bf16.msra.mxu1 %v4384_v2  ;;  %2759 = vmatpush.bf16.msra.mxu2 %v4672_v3  ;;  %v2498_v57 = vpop.f32.mrf.mxu3  ;;  %v5397_v3 = vld [vmem:[%s6400_s9] sm:$0xff]  ;;  %v2785_v11 = vmax.f32 %v2373_v51, %v2769_v61  ;;  %v5416_v0 = vld [vmem:[%s6400_s9 + $0x98] sm:$0xff] }
 0x287   :  { %v2778_v5 = vmul.f32 0.2, %v2431_v14 }
 0x289   :  { %3327 = vmatpush.bf16.msra.mxu3 %v5402_v4  ;;  %3340 = vmatpush.bf16.msrb.mxu0 %v5411_v53  ;;  %v5406_v4 = vld [vmem:[%s6400_s9 + $0x48] sm:$0xff]  ;;  %v2793_v53 = vmax.f32 %v2375_v50, %v2777_v21  ;;  %v2794_v22 = vmax.f32 %v2431_v14, %v2778_v5  ;;  %v5443_v5 = vld [vmem:[%s6400_s9 + $0x170] sm:$0xff] }
 0x28a   :  { %2747 = vmatpush.bf16.msra.mxu1 %v4352_v12  ;;  %2760 = vmatpush.bf16.msra.mxu2 %v4640_v13  ;;  %v2512_v13 = vpop.f32.mrf.mxu0 }
 0x28b   :  { %v2801_v19 = vpack.c.bf16 %v2793_v53, %v2785_v11  ;;  %v5441_v11 = vld [vmem:[%s6400_s9 + $0x160] sm:$0xff] }
 0x28d   :  { %3328 = vmatpush.bf16.msra.mxu3 %v5401_v16  ;;  %3341 = vmatpush.bf16.msrb.mxu0 %v5410_v17 }
 0x28e   :  { %2748 = vmatpush.bf16.msra.mxu1 %v4320_v27  ;;  %2761 = vmatpush.bf16.msra.mxu2 %v4608_v28  ;;  %v2500_v28 = vpop.f32.mrf.mxu3 }
 0x28f   :  { %v2501_v41 = vadd.f32 %v2500_v28, %v1028_v8 }
 0x290   :  { %v2526_v16 = vpop.f32.mrf.mxu1 }
 0x291   :  { %3329 = vmatpush.bf16.msra.mxu3 %v5400_v30  ;;  %3342 = vmatpush.bf16.msrb.mxu0 %v5409_v10 }
 0x292   :  { %3353 = vmatpush.bf16.msrb.mxu1 %v5420_v39  ;;  %2762 = vmatpush.bf16.msra.mxu2 %v4576_v45 }
 0x293   :  { %2749 = vmatmul.bf16.vlgmr.msra.gmra.mxu1 %v6083_v40  ;;  %v2415_v40 = vadd.f32 %v6132_v15, %v2401_v52  ;;  %v1027_v15 = vperm.slane %v6156_v63, 2  ;;  %v5413_v52 = vld [vmem:[%s6400_s9 + $0x80] sm:$0xff] }
 0x295   :  { %3330 = vmatpush.bf16.msra.mxu3 %v5399_v33  ;;  %3343 = vmatpush.bf16.msrb.mxu0 %v5408_v29  ;;  %v2429_v2 = vadd.f32 %v6140_v35, %v2415_v40  ;;  %v5426_v35 = vld [vmem:[%s6400_s9 + $0xe8] sm:$0xff]  ;;  %v2445_v7 = vadd.f32 %v2444_v38, %v1027_v15  ;;  %v2443_v17 = vadd.f32 %v6158_v1, %v1027_v15  ;;  %v2514_v33 = vpop.f32.mrf.mxu0  ;;  %v5432_v40 = vld [vmem:[%s6400_s9 + $0x118] sm:$0xff] }
 0x296   :  { %3354 = vmatpush.bf16.msrb.mxu1 %v5419_v46  ;;  %3367 = vmatpush.bf16.msrb.mxu2 %v5428_v49  ;;  %v2499_v1 = vadd.f32 %v2498_v57, %v1028_v8  ;;  %v2515_v34 = vadd.f32 %v2514_v33, %v2501_v41  ;;  %v5421_v57 = vld [vmem:[%s6400_s9 + $0xc0] sm:$0xff]  ;;  %v5444_v15 = vld [vmem:[%s6400_s9 + $0x178] sm:$0xff] }
 0x297   :  { %2763 = vmatmul.bf16.vlgmr.msra.gmra.mxu2 %v6087_v55  ;;  %v5417_v55 = vld [vmem:[%s6400_s9 + $0xa0] sm:$0xff]  ;;  %v2770_v12 = vmul.f32 0.2, %v2429_v2  ;;  %v2459_v25 = vadd.f32 %v2458_v62, %v2445_v7  ;;  %v2457_v30 = vadd.f32 %v6177_v23, %v2443_v17  ;;  %v5434_v23 = vld [vmem:[%s6400_s9 + $0x128] sm:$0xff] }
 0x298   :  { %v2513_v42 = vadd.f32 %v2512_v13, %v2499_v1  ;;  %v2528_v29 = vpop.f32.mrf.mxu1  ;;  %v5422_v62 = vld [vmem:[%s6400_s9 + $0xc8] sm:$0xff] }
 0x299   :  { %3331 = vmatpush.bf16.msra.mxu3 %v5398_v47  ;;  %3344 = vmatpush.bf16.msrb.mxu0 %v5407_v56  ;;  %v2786_v27 = vmax.f32 %v2429_v2, %v2770_v12  ;;  %v2473_v10 = vadd.f32 %v2472_v54, %v2459_v25  ;;  %v2471_v38 = vadd.f32 %v6179_v24, %v2457_v30  ;;  %v5414_v24 = vld [vmem:[%s6400_s9 + $0x88] sm:$0xff]  ;;  %v5431_v2 = vld [vmem:[%s6400_s9 + $0x110] sm:$0xff] }
 0x29a   :  { %3355 = vmatpush.bf16.msrb.mxu1 %v5418_v48  ;;  %3368 = vmatpush.bf16.msrb.mxu2 %v5427_v58  ;;  %v2540_v37 = vpop.f32.mrf.mxu2  ;;  %v2527_v45 = vadd.f32 %v2526_v16, %v2513_v42  ;;  %v2529_v51 = vadd.f32 %v2528_v29, %v2515_v34  ;;  %v5451_v42 = vld [vmem:[%s6400_s9 + $0x1b0] sm:$0xff]  ;;  %v5449_v29 = vld [vmem:[%s6400_s9 + $0x1a0] sm:$0xff]  ;;  %v5448_v34 = vld [vmem:[%s6400_s9 + $0x198] sm:$0xff] }
 0x29b   :  { %v2802_v31 = vpack.c.bf16 %v2794_v22, %v2786_v27  ;;  %v2487_v39 = vadd.f32 %v2486_v6, %v2473_v10  ;;  %v2485_v43 = vadd.f32 %v6197_v44, %v2471_v38  ;;  %v5433_v44 = vld [vmem:[%s6400_s9 + $0x120] sm:$0xff]  ;;  %v5439_v22 = vld [vmem:[%s6400_s9 + $0x150] sm:$0xff]  ;;  %v5438_v10 = vld [vmem:[%s6400_s9 + $0x148] sm:$0xff] }
 0x29c   :  { %v2541_v46 = vadd.f32 %v2540_v37, %v2527_v45  ;;  %v5429_v6 = vld [vmem:[%s6400_s9 + $0x100] sm:$0xff]  ;;  %v5452_v38 = vld [vmem:[%s6400_s9 + $0x1b8] sm:$0xff] }
 0x29d   :  { %3332 = vmatpush.bf16.msra.mxu3 %v5397_v3  ;;  %3345 = vmatpush.bf16.msrb.mxu0 %v5406_v4  ;;  %v2779_v50 = vmul.f32 0.2, %v2487_v39  ;;  %v2771_v49 = vmul.f32 0.2, %v2485_v43  ;;  %v5430_v4 = vld [vmem:[%s6400_s9 + $0x108] sm:$0xff] }
 0x29e   :  { %3356 = vmatpush.bf16.msrb.mxu1 %v5417_v55  ;;  %3369 = vmatpush.bf16.msrb.mxu2 %v5426_v35  ;;  %v2772_v47 = vmul.f32 0.2, %v2541_v46  ;;  %v5442_v55 = vld [vmem:[%s6400_s9 + $0x168] sm:$0xff]  ;;  %v1029_v35 = vperm.slane %v6156_v63, 4 }
 0x29f   :  { %v2795_v54 = vmax.f32 %v2487_v39, %v2779_v50  ;;  %v2787_v21 = vmax.f32 %v2485_v43, %v2771_v49  ;;  %v1030_v43 = vperm.slane %v6156_v63, 5 }
 0x2a0   :  { %3333 = vmatmul.bf16.vlgmr.msra.gmra.mxu3 %v2801_v19  ;;  %v2788_v58 = vmax.f32 %v2541_v46, %v2772_v47 }
 0x2a1   :  { %3381 = vmatpush.bf16.msrb.mxu3 %v5436_v9  ;;  %3346 = vmatpush.bf16.msrb.mxu0 %v5405_v18  ;;  %v2803_v48 = vpack.c.bf16 %v2795_v54, %v2787_v21  ;;  %v2568_v7 = vpop.f32.mrf.mxu0  ;;  %v5440_v18 = vld [vmem:[%s6400_s9 + $0x158] sm:$0xff] }
 0x2a2   :  { %3357 = vmatpush.bf16.msrb.mxu1 %v5416_v0  ;;  %3370 = vmatpush.bf16.msrb.mxu2 %v5425_v20  ;;  %v2542_v60 = vpop.f32.mrf.mxu2 }
 0x2a3   :  { %v2543_v56 = vadd.f32 %v2542_v60, %v2529_v51  ;;  %v2554_v53 = vpop.f32.mrf.mxu3  ;;  %v5447_v51 = vld [vmem:[%s6400_s9 + $0x190] sm:$0xff] }
 0x2a4   :  { %3347 = vmatmul.bf16.vlgmr.msrb.gmra.mxu0 %v2802_v31  ;;  %v2555_v9 = vadd.f32 %v2554_v53, %v1029_v35  ;;  %v5458_v53 = vld [vmem:[%s6400_s9 + $0x1e8] sm:$0xff] }
 0x2a5   :  { %3382 = vmatpush.bf16.msrb.mxu3 %v5435_v26  ;;  %v2780_v14 = vmul.f32 0.2, %v2543_v56  ;;  %3395 = vmatpush.bf16.msra.mxu0 %v5444_v15 }
 0x2a6   :  { %3358 = vmatpush.bf16.msrb.mxu1 %v5415_v32  ;;  %3371 = vmatpush.bf16.msrb.mxu2 %v5424_v36  ;;  %v2569_v17 = vadd.f32 %v2568_v7, %v2555_v9  ;;  %v5437_v36 = vld [vmem:[%s6400_s9 + $0x140] sm:$0xff]  ;;  %v5456_v9 = vld [vmem:[%s6400_s9 + $0x1d8] sm:$0xff] }
 0x2a7   :  { %v2796_v61 = vmax.f32 %v2543_v56, %v2780_v14 }
 0x2a9   :  { %3383 = vmatpush.bf16.msrb.mxu3 %v5434_v23  ;;  %v2804_v3 = vpack.c.bf16 %v2796_v61, %v2788_v58  ;;  %3396 = vmatpush.bf16.msra.mxu0 %v5443_v5  ;;  %v2570_v0 = vpop.f32.mrf.mxu0  ;;  %v5450_v23 = vld [vmem:[%s6400_s9 + $0x1a8] sm:$0xff]  ;;  %v1031_v5 = vperm.slane %v6156_v63, 6 }
 0x2aa   :  { %3359 = vmatpush.bf16.msrb.mxu1 %v5414_v24  ;;  %3372 = vmatpush.bf16.msrb.mxu2 %v5423_v59 }
 0x2ab   :  { %v2556_v12 = vpop.f32.mrf.mxu3 }
 0x2ac   :  { %v2557_v16 = vadd.f32 %v2556_v12, %v1029_v35  ;;  %v5457_v35 = vld [vmem:[%s6400_s9 + $0x1e0] sm:$0xff] }
 0x2ad   :  { %3384 = vmatpush.bf16.msrb.mxu3 %v5433_v44  ;;  %3397 = vmatpush.bf16.msra.mxu0 %v5442_v55 }
 0x2ae   :  { %3360 = vmatpush.bf16.msrb.mxu1 %v5413_v52  ;;  %3373 = vmatpush.bf16.msrb.mxu2 %v5422_v62  ;;  %v2571_v25 = vadd.f32 %v2570_v0, %v2557_v16 }
 0x2b0   :  { %v2582_v8 = vpop.f32.mrf.mxu1 }
 0x2b1   :  { %3385 = vmatpush.bf16.msrb.mxu3 %v5432_v40  ;;  %3361 = vmatmul.bf16.vlgmr.msrb.gmra.mxu1 %v2803_v48  ;;  %v2583_v19 = vadd.f32 %v2582_v8, %v2569_v17  ;;  %v5446_v40 = vld [vmem:[%s6400_s9 + $0x188] sm:$0xff]  ;;  %v5445_v48 = vld [vmem:[%s6400_s9 + $0x180] sm:$0xff]  ;;  %v5455_v17 = vld [vmem:[%s6400_s9 + $0x1d0] sm:$0xff] }
 0x2b2   :  { %3374 = vmatpush.bf16.msrb.mxu2 %v5421_v57  ;;  %3398 = vmatpush.bf16.msra.mxu0 %v5441_v11 }
 0x2b3   :  { %3409 = vmatpush.bf16.msra.mxu1 %v5452_v38 }
 0x2b5   :  { %3386 = vmatpush.bf16.msrb.mxu3 %v5431_v2  ;;  %3375 = vmatmul.bf16.vlgmr.msrb.gmra.mxu2 %v2804_v3  ;;  %v5460_v2 = vld [vmem:[%s6400_s9 + $0x1f8] sm:$0xff]  ;;  %v5459_v3 = vld [vmem:[%s6400_s9 + $0x1f0] sm:$0xff] }
 0x2b6   :  { %3399 = vmatpush.bf16.msra.mxu0 %v5440_v18  ;;  %3423 = vmatpush.bf16.msra.mxu2 %v5460_v2 }
 0x2b7   :  { %3410 = vmatpush.bf16.msra.mxu1 %v5451_v42 }
 0x2b8   :  { %v2584_v20 = vpop.f32.mrf.mxu1 }
 0x2b9   :  { %3387 = vmatpush.bf16.msrb.mxu3 %v5430_v4  ;;  %v2585_v26 = vadd.f32 %v2584_v20, %v2571_v25  ;;  %v5454_v25 = vld [vmem:[%s6400_s9 + $0x1c8] sm:$0xff] }
 0x2ba   :  { %v2596_v13 = vpop.f32.mrf.mxu2  ;;  %3400 = vmatpush.bf16.msra.mxu0 %v5439_v22  ;;  %3424 = vmatpush.bf16.msra.mxu2 %v5459_v3 }
 0x2bb   :  { %v2597_v1 = vadd.f32 %v2596_v13, %v2583_v19  ;;  %3411 = vmatpush.bf16.msra.mxu1 %v5450_v23 }
 0x2bd   :  { %3388 = vmatpush.bf16.msrb.mxu3 %v5429_v6  ;;  %v2773_v28 = vmul.f32 0.2, %v2597_v1 }
 0x2be   :  { %3401 = vmatpush.bf16.msra.mxu0 %v5438_v10  ;;  %3425 = vmatpush.bf16.msra.mxu2 %v5458_v53 }
 0x2bf   :  { %v2789_v32 = vmax.f32 %v2597_v1, %v2773_v28  ;;  %3412 = vmatpush.bf16.msra.mxu1 %v5449_v29 }
 0x2c1   :  { %v2624_v45 = vpop.f32.mrf.mxu0 }
 0x2c2   :  { %v2598_v27 = vpop.f32.mrf.mxu2  ;;  %3402 = vmatpush.bf16.msra.mxu0 %v5437_v36  ;;  %3426 = vmatpush.bf16.msra.mxu2 %v5457_v35  ;;  %v1032_v36 = vperm.slane %v6156_v63, 7 }
 0x2c3   :  { %v2599_v30 = vadd.f32 %v2598_v27, %v2585_v26  ;;  %v2610_v41 = vpop.f32.mrf.mxu3  ;;  %3413 = vmatpush.bf16.msra.mxu1 %v5448_v34 }
 0x2c4   :  { %v2611_v24 = vadd.f32 %v2610_v41, %v1030_v43 }
 0x2c5   :  { %v2781_v31 = vmul.f32 0.2, %v2599_v30 }
 0x2c6   :  { %v2625_v44 = vadd.f32 %v2624_v45, %v2611_v24  ;;  %3427 = vmatpush.bf16.msra.mxu2 %v5456_v9 }
 0x2c7   :  { %v2797_v37 = vmax.f32 %v2599_v30, %v2781_v31  ;;  %3414 = vmatpush.bf16.msra.mxu1 %v5447_v51  ;;  %v5453_v30 = vld [vmem:[%s6400_s9 + $0x1c0] sm:$0xff] }
 0x2c9   :  { %v2805_v39 = vpack.c.bf16 %v2797_v37, %v2789_v32  ;;  %v2626_v52 = vpop.f32.mrf.mxu0 }
 0x2ca   :  { %3428 = vmatpush.bf16.msra.mxu2 %v5455_v17 }
 0x2cb   :  { %3389 = vmatmul.bf16.vlgmr.msrb.gmra.mxu3 %v2805_v39  ;;  %v2612_v59 = vpop.f32.mrf.mxu3  ;;  %3415 = vmatpush.bf16.msra.mxu1 %v5446_v40 }
 0x2cc   :  { %v2613_v46 = vadd.f32 %v2612_v59, %v1030_v43 }
 0x2ce   :  { %v2627_v62 = vadd.f32 %v2626_v52, %v2613_v46  ;;  %3429 = vmatpush.bf16.msra.mxu2 %v5454_v25 }
 0x2cf   :  { %3416 = vmatpush.bf16.msra.mxu1 %v5445_v48 }
 0x2d0   :  { %v2638_v33 = vpop.f32.mrf.mxu1 }
 0x2d1   :  { %v2639_v49 = vadd.f32 %v2638_v33, %v2625_v44 }
 0x2d2   :  { %3430 = vmatpush.bf16.msra.mxu2 %v5453_v30 }
 0x2d8   :  { %v2640_v60 = vpop.f32.mrf.mxu1 }
 0x2d9   :  { %v2641_v47 = vadd.f32 %v2640_v60, %v2627_v62 }
 0x2da   :  { %v2652_v50 = vpop.f32.mrf.mxu2 }
 0x2db   :  { %v2653_v54 = vadd.f32 %v2652_v50, %v2639_v49 }
 0x2dd   :  { %v2774_v21 = vmul.f32 0.2, %v2653_v54 }
 0x2df   :  { %v2790_v58 = vmax.f32 %v2653_v54, %v2774_v21 }
 0x2e1   :  { %v2680_v6 = vpop.f32.mrf.mxu0 }
 0x2e2   :  { %v2654_v56 = vpop.f32.mrf.mxu2 }
 0x2e3   :  { %v2655_v14 = vadd.f32 %v2654_v56, %v2641_v47  ;;  %v2666_v4 = vpop.f32.mrf.mxu3  ;;  %v5465_v56 = vld [vmem:[%s6401_s10] ss:$0 sm:$0xff] }
 0x2e4   :  { %v2667_v7 = vadd.f32 %v2666_v4, %v1031_v5 }
 0x2e5   :  { %v2782_v57 = vmul.f32 0.2, %v2655_v14 }
 0x2e6   :  { %v2681_v13 = vadd.f32 %v2680_v6, %v2667_v7 }
 0x2e7   :  { %v2798_v61 = vmax.f32 %v2655_v14, %v2782_v57 }
 0x2e9   :  { %v2806_v15 = vpack.c.bf16 %v2798_v61, %v2790_v58  ;;  %v2682_v18 = vpop.f32.mrf.mxu0 }
 0x2eb   :  { %3403 = vmatmul.bf16.vlgmr.msra.gmra.mxu0 %v2806_v15  ;;  %v2668_v8 = vpop.f32.mrf.mxu3 }
 0x2ec   :  { %v2669_v12 = vadd.f32 %v2668_v8, %v1031_v5 }
 0x2ee   :  { %v2683_v22 = vadd.f32 %v2682_v18, %v2669_v12 }
 0x2f0   :  { %v2694_v55 = vpop.f32.mrf.mxu1 }
 0x2f1   :  { %v2695_v16 = vadd.f32 %v2694_v55, %v2681_v13 }
 0x2f8   :  { %v2696_v19 = vpop.f32.mrf.mxu1 }
 0x2f9   :  { %v2697_v20 = vadd.f32 %v2696_v19, %v2683_v22 }
 0x2fa   :  { %v2708_v11 = vpop.f32.mrf.mxu2 }
 0x2fb   :  { %v2709_v0 = vadd.f32 %v2708_v11, %v2695_v16 }
 0x2fd   :  { %v2775_v26 = vmul.f32 0.2, %v2709_v0 }
 0x2ff   :  { %v2791_v10 = vmax.f32 %v2709_v0, %v2775_v26 }
 0x301   :  { %v2736_v38 = vpop.f32.mrf.mxu0 }
 0x302   :  { %v2710_v1 = vpop.f32.mrf.mxu2 }
 0x303   :  { %v2711_v27 = vadd.f32 %v2710_v1, %v2697_v20  ;;  %v2722_v37 = vpop.f32.mrf.mxu3 }
 0x304   :  { %v2723_v41 = vadd.f32 %v2722_v37, %v1032_v36 }
 0x305   :  { %v2783_v28 = vmul.f32 0.2, %v2711_v27 }
 0x306   :  { %v2737_v45 = vadd.f32 %v2736_v38, %v2723_v41 }
 0x307   :  { %v2799_v31 = vmax.f32 %v2711_v27, %v2783_v28 }
 0x309   :  { %v2807_v32 = vpack.c.bf16 %v2799_v31, %v2791_v10  ;;  %v2738_v29 = vpop.f32.mrf.mxu0 }
 0x30b   :  { %3417 = vmatmul.bf16.vlgmr.msra.gmra.mxu1 %v2807_v32  ;;  %v2724_v42 = vpop.f32.mrf.mxu3 }
 0x30c   :  { %v2725_v43 = vadd.f32 %v2724_v42, %v1032_v36 }
 0x30e   :  { %v2739_v59 = vadd.f32 %v2738_v29, %v2725_v43 }
 0x310   :  { %v2750_v39 = vpop.f32.mrf.mxu1 }
 0x311   :  { %v2751_v33 = vadd.f32 %v2750_v39, %v2737_v45 }
 0x318   :  { %v2752_v24 = vpop.f32.mrf.mxu1 }
 0x319   :  { %v2753_v34 = vadd.f32 %v2752_v24, %v2739_v59 }
 0x31a   :  { %v2764_v23 = vpop.f32.mrf.mxu2 }
 0x31b   :  { %v2765_v50 = vadd.f32 %v2764_v23, %v2751_v33 }
 0x31d   :  { %v2776_v44 = vmul.f32 0.2, %v2765_v50 }
 0x31f   :  { %v2792_v52 = vmax.f32 %v2765_v50, %v2776_v44 }
 0x321   :  { %v3348_v54 = vpop.f32.mrf.mxu0 }
 0x322   :  { %v2766_v46 = vpop.f32.mrf.mxu2 }
 0x323   :  { %v2767_v49 = vadd.f32 %v2766_v46, %v2753_v34  ;;  %v3334_v62 = vpop.f32.mrf.mxu3 }
 0x324   :  { %v3335_v57 = vadd.f32 %v5465_v56, %v3334_v62 }
 0x325   :  { %v2784_v51 = vmul.f32 0.2, %v2767_v49 }
 0x326   :  { %v3349_v58 = vadd.f32 %v3348_v54, %v3335_v57 }
 0x327   :  { %v2800_v60 = vmax.f32 %v2767_v49, %v2784_v51 }
 0x329   :  { %v2808_v63 = vpack.c.bf16 %v2800_v60, %v2792_v52  ;;  %v3350_v14 = vpop.f32.mrf.mxu0 }
 0x32b   :  { %3431 = vmatmul.bf16.vlgmr.msra.gmra.mxu2 %v2808_v63  ;;  %v3336_v40 = vpop.f32.mrf.mxu3 }
 0x32c   :  { %v3337_v4 = vadd.f32 %v5465_v56, %v3336_v40 }
 0x32e   :  { %v3362_v47 = vpop.f32.mrf.mxu1  ;;  %v3351_v55 = vadd.f32 %v3350_v14, %v3337_v4 }
 0x32f   :  { %v3363_v2 = vadd.f32 %v3362_v47, %v3349_v58 }
 0x336   :  { %v3364_v48 = vpop.f32.mrf.mxu1 }
 0x337   :  { %v3365_v7 = vadd.f32 %v3364_v48, %v3351_v55 }
 0x338   :  { %v3376_v21 = vpop.f32.mrf.mxu2 }
 0x339   :  { %v3377_v53 = vadd.f32 %v3376_v21, %v3363_v2 }
 0x340   :  { %v3378_v15 = vpop.f32.mrf.mxu2 }
 0x341   :  { %v3379_v12 = vadd.f32 %v3378_v15, %v3365_v7 }
 0x34e   :  { %v3390_v61 = vpop.f32.mrf.mxu3 }
 0x34f   :  { %v3391_v6 = vadd.f32 %v3390_v61, %v3377_v53 }
 0x356   :  { %v3392_v9 = vpop.f32.mrf.mxu3 }
 0x357   :  { %v3393_v17 = vadd.f32 %v3392_v9, %v3379_v12 }
 0x368   :  { %v3404_v3 = vpop.f32.mrf.mxu0 }
 0x369   :  { %v3405_v35 = vadd.f32 %v3404_v3, %v3391_v6 }
 0x370   :  { %v3406_v16 = vpop.f32.mrf.mxu0 }
 0x371   :  { %v3407_v22 = vadd.f32 %v3406_v16, %v3393_v17 }
 0x388   :  { %v3418_v5 = vpop.f32.mrf.mxu1 }
 0x389   :  { %v3419_v8 = vadd.f32 %v3418_v5, %v3405_v35 }
 0x390   :  { %v3420_v19 = vpop.f32.mrf.mxu1 }
 0x391   :  { %v3421_v0 = vadd.f32 %v3420_v19, %v3407_v22 }
 0x3ae   :  { %v3432_v11 = vpop.f32.mrf.mxu2 }
 0x3af   :  { %v3433_v13 = vadd.f32 %v3432_v11, %v3419_v8 }
 0x3b1   :  { %v5057_v18 = vclamps-f32 %v3433_v13, 1.0 }
 0x3b3   :  { %3441 = vst [vmem:[%s6402_s11] sm:$0xff] %v5057_v18 }
 0x3b6   :  { %v3434_v20 = vpop.f32.mrf.mxu2 }
 0x3b7   :  { %v3435_v25 = vadd.f32 %v3434_v20, %v3421_v0 }
 0x3b9   :  { %v5058_v1 = vclamps-f32 %v3435_v25, 1.0 }
 0x3bb   :  { %3442 = vst [vmem:[%s6402_s11 + $0x8] sm:$0xff] %v5058_v1 }
 0x3bc   :  { %3447 = vsyncpa [#allocation3], 1 }

</bundles_post_ra>
